<compile_context>
chip_gen: v7x
topology: tpu7x:2x2x1
jax: 0.10.0
libtpu: 0.0.40
codegen_flags: <defaults>
</compile_context>

<pallas_src>
import numpy as np
import jax
import jax.numpy as jnp
from jax import lax
from jax.experimental import pallas as pl
from jax.experimental.pallas import tpu as pltpu

H = 768  # hidden size implied by nn.Linear(2 * 768, 768)
_INV_SQRT2 = 0.7071067811865476


def _gelu_exact(x):
    # transformers ACT2FN['gelu'] is the exact (erf-based) GELU
    return 0.5 * x * (1.0 + lax.erf(x * _INV_SQRT2))


# ---------------------------------------------------------------------------
# Kernel: one output-column tile of  gelu( [x , labels*label_emb] @ W.T + b )
#   a_ref : (M, 2H)   bf16 activations (full rows, replicated across steps)
#   w_ref : (2H, Hn)  bf16 disjoint weight column-half
#   b_ref : (1, Hn)   f32 bias column-half
#   o_ref : (M, Hn)   f32 output column-half
# ---------------------------------------------------------------------------
def recons_kernel(a_ref, w_ref, b_ref, o_ref):
    acc = jnp.dot(a_ref[...], w_ref[...], preferred_element_type=jnp.float32)
    acc = acc + b_ref[...]                       # f32 epilogue
    o_ref[...] = _gelu_exact(acc).astype(o_ref.dtype)


def prepare_recons_params(W, bias):
    """One-time (init-path) parameter preparation.

    * torch weight (H, 2H) -> W.T (2H, H), kept as a single concatenated matrix
      so the kernel does ONE K=1536 dot instead of two K=768 dots + a VPU add.
    * stored bf16 at rest -> no per-call f32->bf16 cast / duplicate HBM pass.
    """
    w_cat = jnp.asarray(W).T.astype(jnp.bfloat16)                 # (2H, H)
    bias2 = jnp.asarray(bias).reshape(1, -1).astype(jnp.float32)  # (1, H)
    return w_cat, bias2


def recons_forward(x, label_emb, labels, w_cat, bias2, *, n_split=2):
    B, C, Hh = x.shape
    M = B * C
    K2 = w_cat.shape[0]
    assert K2 == 2 * Hh and w_cat.shape[1] == Hh and Hh % (128 * n_split) == 0

    # labels * label_emb expansion + concat with x + bf16 cast: activation-only
    # traffic (~96 KiB at M=16), fused by XLA into a single producer.
    le = label_emb[None, :, :] * labels[..., None].astype(jnp.float32)   # (B, C, H)
    a = jnp.concatenate([x, le], axis=-1).reshape(M, K2).astype(jnp.bfloat16)

    Hn = Hh // n_split
    cost = pl.CostEstimate(
        flops=2 * M * K2 * Hh,
        transcendentals=M * Hh,
        bytes_accessed=(a.size + w_cat.size) * 2 + bias2.size * 4 + M * Hh * 4,
    )

    out = pl.pallas_call(
        recons_kernel,
        out_shape=jax.ShapeDtypeStruct((M, Hh), jnp.float32),
        grid=(n_split,),
        in_specs=[
            pl.BlockSpec((M, K2), lambda j: (0, 0)),    # activations: all rows (small)
            pl.BlockSpec((K2, Hn), lambda j: (0, j)),   # weights: disjoint column halves
            pl.BlockSpec((1, Hn), lambda j: (0, j)),    # bias column halves
        ],
        out_specs=pl.BlockSpec((M, Hn), lambda j: (0, j)),
        # "parallel": on v7x the two steps land on the two TensorCores and each
        # pulls a disjoint half of the weight stream (no duplication); on
        # single-TC v5e/v6e this is just a cheap 2-step loop.
        compiler_params=pltpu.CompilerParams(dimension_semantics=("parallel",)),
        cost_estimate=cost,
    )(a, w_cat, bias2)
    return out.reshape(B, C, Hh)


if __name__ == "__main__":
    # --------------------- deterministic synthetic setup --------------------
    B = 2          # batch
    C = 8          # num_class (number of labels)
    S = 8          # padded label-name token length
    V = 64         # synthetic vocab size
    PAD = 0        # pad_token_id stand-in

    key = jax.random.PRNGKey(0)
    k_tok, k_emb, k_w, k_b, k_x, k_lab = jax.random.split(key, 6)

    # Synthetic tokenized label names (stand-in for bert_value_dict + tokenizer)
    label_name = jax.random.randint(k_tok, (C, S), 1, V)
    pad_tail = jnp.arange(S)[None, :] >= (3 + jnp.arange(C)[:, None] % (S - 2))
    label_name = jnp.where(pad_tail, PAD, label_name)          # (C, S) int32
    label_mask = (label_name != PAD).astype(jnp.float32)       # (C, S)

    # Stand-in for model.embeddings: deterministic embedding table lookup
    emb_table = 0.02 * jax.random.normal(k_emb, (V, H), dtype=jnp.float32)
    tok_emb = jnp.take(emb_table, label_name, axis=0)          # (C, S, H)

    # Masked mean pooling: plain XLA (matches torch: sum(emb*mask)/sum(mask)).
    # A dedicated Pallas call here would cost more launch overhead than work.
    pooled = jnp.einsum('cs,csh->ch', label_mask, tok_emb) / label_mask.sum(
        axis=1, keepdims=True)                                 # (C, H)

    # label_attention_mask built from a synthetic hierarchy (slot.pt stand-in)
    path_dict = {v: v // 2 for v in range(C)}
    A = np.zeros((C, C), dtype=np.float32)
    for kk, vv in path_dict.items():
        A[kk, vv] = 1.0
        A[vv, kk] = 1.0
        A[kk, kk] = 1.0
        A[vv, vv] = 1.0
    A = jnp.asarray(A)

    # TODO(synk): frozen BERT encoder (model_freeze) has no clean single-kernel
    # Pallas equivalent; replaced by deterministic mask-normalized mixing.
    label_emb = (A @ pooled) / jnp.sum(A, axis=-1, keepdims=True)   # (C, H)

    # TODO(synk): nn.Dropout(0.1) treated as identity (eval mode).

    # recons Linear(2*768, 768) parameters; bf16-at-rest prepared ONCE (init path).
    W = 0.02 * jax.random.normal(k_w, (H, 2 * H), dtype=jnp.float32)  # torch layout
    bias = 0.02 * jax.random.normal(k_b, (H,), dtype=jnp.float32)
    w_cat, bias2 = prepare_recons_params(W, bias)

    # Forward inputs
    x = jax.random.normal(k_x, (B, C, H), dtype=jnp.float32)
    labels = (jax.random.uniform(k_lab, (B, C)) > 0.5).astype(jnp.float32)

    # ------------------------------ run kernel ------------------------------
    out = recons_forward(x, label_emb, labels, w_cat, bias2)
    out = jax.block_until_ready(out)
    assert out.shape == (B, C, H)

    # ----------------------------- correctness ------------------------------
    le_ref = label_emb[None, :, :] * labels[..., None]
    cat32 = jnp.concatenate([x, le_ref], axis=-1).reshape(B * C, 2 * H)

    # (a) Tight check: same bf16-rounded operands, high-precision f32 math.
    catb = cat32.astype(jnp.bfloat16).astype(jnp.float32)
    wb = w_cat.astype(jnp.float32)
    pre = jnp.dot(catb, wb, precision=lax.Precision.HIGHEST) + bias[None, :]
    ref_bf = (0.5 * pre * (1.0 + lax.erf(pre * _INV_SQRT2))).reshape(B, C, H)
    assert np.allclose(np.asarray(out), np.asarray(ref_bf), atol=1e-4, rtol=1e-4)

    # (b) Semantics check vs. the pure-f32 torch reference (bf16 quantization slack)
    pre32 = jnp.dot(cat32, W.T, precision=lax.Precision.HIGHEST) + bias[None, :]
    ref32 = (0.5 * pre32 * (1.0 + lax.erf(pre32 * _INV_SQRT2))).reshape(B, C, H)
    assert np.allclose(np.asarray(out), np.asarray(ref32), atol=2e-2, rtol=2e-2)

    print("KERNEL_OK")
</pallas_src>

<mosaic_0001>
module attributes {stable_mosaic.version = 11 : i64} {
  func.func @recons_kernel(%arg0: i32, %arg1: memref<16x1536xbf16, #tpu.memory_space<vmem>>, %arg2: memref<1536x384xbf16, #tpu.memory_space<vmem>>, %arg3: memref<1x384xf32, #tpu.memory_space<vmem>>, %arg4: memref<16x384xf32, #tpu.memory_space<vmem>>) attributes {dimension_semantics = [#tpu.dimension_semantics<parallel>], iteration_bounds = array<i64: 2>, scalar_prefetch = 0 : i64, scratch_operands = 0 : i64, tpu.core_type = #tpu.core_type<tc>, window_params = [{pipeline_mode = #tpu.pipeline_mode<synchronous>, transform_indices = @transform_0, window_bounds = array<i64: 16, 1536>}, {transform_indices = @transform_1, window_bounds = array<i64: 1536, 384>}, {transform_indices = @transform_2, window_bounds = array<i64: 1, 384>}, {transform_indices = @transform_3, window_bounds = array<i64: 16, 384>}]} {
    %c0 = arith.constant 0 : index
    %c0_0 = arith.constant 0 : index
    %0 = vector.load %arg1[%c0, %c0_0] : memref<16x1536xbf16, #tpu.memory_space<vmem>>, vector<16x1536xbf16>
    %c0_1 = arith.constant 0 : index
    %c0_2 = arith.constant 0 : index
    %1 = vector.load %arg2[%c0_1, %c0_2] : memref<1536x384xbf16, #tpu.memory_space<vmem>>, vector<1536x384xbf16>
    %cst = arith.constant dense<0.000000e+00> : vector<16x384xf32>
    %2 = tpu.matmul %0, %1, %cst {dimension_numbers = #tpu.dot_dimension_numbers<[1], [0], [0], [1], [0, 0, 1, 1], [], []>} : vector<16x1536xbf16>, vector<1536x384xbf16>, vector<16x384xf32> -> vector<16x384xf32>
    %c0_3 = arith.constant 0 : index
    %c0_4 = arith.constant 0 : index
    %3 = vector.load %arg3[%c0_3, %c0_4] : memref<1x384xf32, #tpu.memory_space<vmem>>, vector<1x384xf32>
    %4 = vector.broadcast %3 : vector<1x384xf32> to vector<16x384xf32>
    %5 = arith.addf %2, %4 : vector<16x384xf32>
    %cst_5 = arith.constant 5.000000e-01 : f32
    %6 = vector.broadcast %cst_5 : f32 to vector<16x384xf32>
    %7 = arith.mulf %6, %5 : vector<16x384xf32>
    %cst_6 = arith.constant 0.707106769 : f32
    %8 = vector.broadcast %cst_6 : f32 to vector<16x384xf32>
    %9 = arith.mulf %5, %8 : vector<16x384xf32>
    %10 = math.erf %9 : vector<16x384xf32>
    %cst_7 = arith.constant 1.000000e+00 : f32
    %11 = vector.broadcast %cst_7 : f32 to vector<16x384xf32>
    %12 = arith.addf %11, %10 : vector<16x384xf32>
    %13 = arith.mulf %7, %12 : vector<16x384xf32>
    %c0_8 = arith.constant 0 : index
    %c0_9 = arith.constant 0 : index
    %14 = vector.load %arg4[%c0_8, %c0_9] : memref<16x384xf32, #tpu.memory_space<vmem>>, vector<16x384xf32>
    tpu.vector_store %arg4[%c0_8, %c0_9], %13 {strides = array<i32>} : memref<16x384xf32, #tpu.memory_space<vmem>>, vector<16x384xf32>,
    return
  }
  func.func @transform_0(%arg0: i32) -> (i32, i32) {
    %c0_i32 = arith.constant 0 : i32
    %c0_i32_0 = arith.constant 0 : i32
    %c0_i32_1 = arith.constant 0 : i32
    return %c0_i32, %c0_i32_0 : i32, i32
  }
  func.func @transform_1(%arg0: i32) -> (i32, i32) {
    %c0_i32 = arith.constant 0 : i32
    %c0_i32_0 = arith.constant 0 : i32
    return %c0_i32, %arg0 : i32, i32
  }
  func.func @transform_2(%arg0: i32) -> (i32, i32) {
    %c0_i32 = arith.constant 0 : i32
    %c0_i32_0 = arith.constant 0 : i32
    return %c0_i32, %arg0 : i32, i32
  }
  func.func @transform_3(%arg0: i32) -> (i32, i32) {
    %c0_i32 = arith.constant 0 : i32
    %c0_i32_0 = arith.constant 0 : i32
    return %c0_i32, %arg0 : i32, i32
  }
}

</mosaic_0001>

<bundles_post_ra>
// kernel: tpu_custom_call.1
= control target key start
LH: loop header
LB: loop body
LE: loop exit
PB: predicated region body
PF: predicated region fallthrough
CT: control target
= control target key end

     0   :  { %s4654_s0 = inlined_call_operand.hbm [shape: bf16[16,1536], index: 0, kind: input, shape index: {}]   ;;  %s4655_s1 = inlined_call_operand.hbm [shape: bf16[1536,768], index: 1, kind: input, shape index: {}]   ;;  %s4656_s2 = inlined_call_operand.hbm [shape: f32[1,768], index: 2, kind: input, shape index: {}]   ;;  %s4657_s3 = inlined_call_operand.hbm [shape: f32[16,768], index: 3, kind: output, shape index: {}]  }
   0x1   :  { %4665 = sst [smem:[#allocation13_spill]] %s4655_s1 }
   0x2   :  { %8 = vsyncpa [#allocation3], 0 }
   0x3   :  { %9 = vsyncpa [#allocation6], 0 }
   0x4   :  { %11 = vsyncpa [#allocation6 + $0x1], 0 }
   0x5   :  { %12 = vsyncpa [#allocation4], 0 }
   0x6   :  { %14 = vsyncpa [#allocation4 + $0x1], 0  ;;  %s4062_s12 = smov 0   ;;  %s4064_s13 = smov 0  }
   0x7   :  { %s4066_s14 = smov 0   ;;  %s4068_s15 = smov 0  }
   0x8 LB: > { %s4083_s16 = sadd.s32 1, %s4028_s15   ;;  %s48_s17 = sadd.s32 1, %s4024_s14  ;;  %s4028_s15 = sphi %s4068_s15, %s4688_s15   ;;  %s4024_s14 = sphi %s4066_s14, %s4687_s14   ;;  %s4020_s13 = sphi %s4064_s13, %s4686_s13   ;;  %s4016_s12 = sphi %s4062_s12, %s4685_s12  }
   0x9   : > { %s45_s18 = ssub.s32 %s4028_s15, %s4083_s16  ;;  %p55_p0 = scmp.ne.s32.totalorder %s4024_s14, %s4020_s13 }
   0xa   : > { %p46_p1 = scmp.eq.s32.totalorder %s45_s18, 0  ;;  %p56_p2 = scmp.eq.s32.totalorder %s4028_s15, 0 }
   0xb   : > { %p3412_p4 = scmp.lt.s32.totalorder %s4028_s15, 2  ;;  %s150_s20 = sand.u32 1, %s4028_s15  }
   0xc   : > { %s4094_s19 = scalar_select %p46_p1, %s4024_s14, %s48_s17  }
   0xd   : > { %p57_p5 = por %p56_p2, %p55_p0  ;;  %s152_s21 = sand.u32 1, %s4024_s14  }
   0xe   : > { %4666 = sst [smem:[#allocation12_spill]] %s4094_s19  ;;  %s3381_s22 = smul.u32 2304, %s152_s21 }
   0xf   : > { %p4103_p6 = pnand %p3412_p4, %p57_p5  ;;  %s3222_s24 = smul.u32 192, %s4028_s15 }
  0x10   : > { %s4668_s1 = sld [smem:[#allocation13_spill]]  ;;  %s154_s28 = scalar_lea.vmem [#allocation5], %s3381_s22 }
  0x11   : > { %s4667_s23 = scalar_select %p4103_p6, 1, 0 }
  0x12   : > { %s161_s29 = sshll.u32 %s154_s28, 4  ;;  %s4115_s30 = scalar_lea.sflag [#allocation6], %s150_s20  ;;  %s4113_s29 = int_to_ptr.vmem [resolvable:$true] %s161_s29 }
  0x13   : > { %p4659_p8 = pneg %p4103_p6 }
  0x16   : > { %s4111_s27 = scalar_lea.hbm %s4668_s1, %s3222_s24  ;;  %s3875_s7 = scalar_lea.hbm %s4668_s1, 73728 }
  0x17   : > { %s3870_s4 = scalar_lea.hbm %s4111_s27, 36864  ;;  %p3876_p11 = scmp.lt.u32.totalorder %s4111_s27, %s4668_s1 }
  0x18   : > { %p3871_p7 = scmp.ne.s32.totalorder %s4111_s27, %s3870_s4  ;;  %p3877_p12 = scmp.lt.u32.totalorder %s3875_s7, %s3870_s4 }
  0x19   : > { %p3879_p1 = scmp.lt.u32.totalorder %s3870_s4, %s4111_s27 }
  0x1a   : > { %p3873_p9 = pnand %p4659_p8, %p3871_p7  ;;  %p3878_p13 = por %p3877_p12, %p3876_p11 }
  0x1c   : > { %p3874_p10 = pneg %p3873_p9  ;;  %p3880_p2 = por %p3879_p1, %p3878_p13 }
  0x1e   : > { %p3881_p4 = pnand %p3880_p2, %p3874_p10 }
  0x20   : > { %3884 = shalt.err (!%p3881_p4)
}
  0x21   : > { %s3885_s10 = scalar_lea.vmem %s4113_s29, 36864  ;;  %s4030_s11 = smov [#allocation5]  }
  0x22   : > { %p3886_p5 = scmp.ne.s32.totalorder %s4113_s29, %s3885_s10  ;;  %s3890_s17 = sshll.u32 %s4030_s11, 4  ;;  %s3891_s17 = int_to_ptr.vmem [resolvable:$false] %s3890_s17 }
  0x23   : > { %s3892_s18 = scalar_lea.vmem %s3891_s17, 73728  ;;  %p3893_p3 = scmp.lt.s32.totalorder %s4113_s29, %s3891_s17 }
  0x24   : > { %p3888_p7 = pnand %p3886_p5, %p4659_p8  ;;  %p3894_p11 = scmp.lt.s32.totalorder %s3892_s18, %s3885_s10 }
  0x26   : > { %p3889_p9 = pneg %p3888_p7  ;;  %p3895_p12 = por %p3894_p11, %p3893_p3 }
  0x28   : > { %p3896_p13 = pnand %p3895_p12, %p3889_p9 }
  0x2a   : > { %3899 = shalt.err (!%p3896_p13)
}
  0x2b   : > { %s4031_s20 = smov 384   ;;  %s4032_s22 = smov 192  }
  0x2c   : > { %s4033_s24 = smov 12   ;;  %s4144_s25 = sadd.s32 4294967295, %s4028_s15  }
  0x2d   : > { %3403 = dma.hbm_to_vmem [thread:$0]  (!%p4103_p6), %s4111_s27, 36864, %s4113_s29, %s4115_s30, %s4031_s20, %s4032_s22, %s4033_s24  }
  0x2e   : > { %s2911_s26 = sadd.s32 4294967294, %s4028_s15   ;;  %p61_p3 = scmp.ne.s32.totalorder %s4020_s13, %s4016_s12 }
  0x2f   : > { %p4658_p10 = scmp.eq.s32.totalorder %s4144_s25, 0  ;;  %p111_p1 = scmp.eq.s32.totalorder %s4144_s25, 1 }
  0x30   : > { %p117_p2 = scmp.eq.s32.totalorder %s2911_s26, 1  ;;  %p2912_p4 = scmp.ge.s32.totalorder %s4028_s15, 1 }
  0x31   : > { %p4154_p5 = por %p4658_p10, %p61_p3  ;;  %p4161_p7 = por %p111_p1, %p55_p0 }
  0x32   : > { %p4165_p9 = por %p117_p2, %p61_p3  ;;  %p124_p11 = scmp.lt.s32.totalorder %s4028_s15, 3 }
  0x33   : > { %s4669_s28 = scalar_select %p4154_p5, 1, 0 }
  0x34   : > { %s4670_s27 = scalar_select %p4161_p7, 1, 0 }
  0x35   : > { %s4671_s29 = scalar_select %p4165_p9, 1, 0 }
  0x36   : > { %p4170_p12 = pnand %p2912_p4, %p124_p11  ;;  %s4034_s5 = smov [#allocation2]  }
  0x37   : > { %s136_s6 = sshll.u32 %s4034_s5, 4  ;;  %s3382_s7 = smul.u32 3, %s152_s21  ;;  %s137_s6 = int_to_ptr.vmem [resolvable:$true] %s136_s6 }
  0x38   : > { %s4672_s4 = scalar_select %p4170_p12, 1, 0 }
  0x39   : > { %p3396_p13 = pneg %p4170_p12  ;;  %s3223_s9 = smul.u32 48, %s4028_s15 }
  0x3a   : > { %s3900_s22 = scalar_lea.hbm %s4654_s0, 1536 }
  0x3b   : > { %p4180_p0 = pnand %p3396_p13, %p4658_p10  ;;  %s4188_s17 = scalar_lea.hbm %s4656_s2, %s3223_s9 }
  0x3c   : > { %p3901_p3 = scmp.ne.s32.totalorder %s4654_s0, %s3900_s22  ;;  %p3907_p11 = scmp.lt.u32.totalorder %s3900_s22, %s4654_s0 }
  0x3d   : > { %p3902_p1 = pneg %p4180_p0 }
  0x3f   : > { %p3903_p2 = pnand %p3902_p1, %p3901_p3 }
  0x41   : > { %p3904_p4 = pneg %p3903_p2 }
  0x43   : > { %p3909_p13 = pnand %p3907_p11, %p3904_p4 }
  0x45   : > { %3912 = shalt.err (!%p3909_p13)
}
  0x46   : > { %s3913_s9 = scalar_lea.vmem %s137_s6, 1536  ;;  %p3921_p7 = scmp.lt.s32.totalorder %s137_s6, %s137_s6 }
  0x47   : > { %p3914_p10 = scmp.ne.s32.totalorder %s137_s6, %s3913_s9  ;;  %p3922_p5 = scmp.lt.s32.totalorder %s3913_s9, %s3913_s9 }
  0x49   : > { %p3916_p8 = pnand %p3914_p10, %p3902_p1  ;;  %p3923_p12 = por %p3922_p5, %p3921_p7 }
  0x4b   : > { %p3917_p9 = pneg %p3916_p8 }
  0x4d   : > { %p3924_p6 = pnand %p3923_p12, %p3917_p9 }
  0x4f   : > { %3927 = shalt.err (!%p3924_p6)
}
  0x50   : > { %s4035_s10 = smov 768   ;;  %s4036_s11 = smov 48  }
  0x51   : > { %3399 = dma.hbm_to_vmem [thread:$0]  (!%p4180_p0), %s4654_s0, 1536, %s137_s6, [#allocation3], %s4035_s10, %s4035_s10, %s4036_s11  }
  0x52   : > { %s175_s22 = scalar_lea.vmem [#allocation7], %s3382_s7  ;;  %s3928_s26 = scalar_lea.hbm %s4188_s17, 48 }
  0x53   : > { %s183_s24 = sshll.u32 %s175_s22, 4  ;;  %p3929_p8 = scmp.ne.s32.totalorder %s4188_s17, %s3928_s26  ;;  %s184_s24 = int_to_ptr.vmem [resolvable:$true] %s183_s24 }
  0x54   : > { %p4674_p10 = scmp.ne.s32.totalorder %s4667_s23, 0  ;;  %s3933_s9 = scalar_lea.hbm %s4656_s2, 96 }
  0x55   : > { %p3934_p9 = scmp.lt.u32.totalorder %s4188_s17, %s4656_s2  ;;  %p3935_p12 = scmp.lt.u32.totalorder %s3933_s9, %s3928_s26 }
  0x56   : > { %p4675_p6 = pneg %p4674_p10  ;;  %p3937_p0 = scmp.lt.u32.totalorder %s3928_s26, %s4188_s17 }
  0x57   : > { %p3936_p3 = por %p3935_p12, %p3934_p9 }
  0x58   : > { %p3931_p5 = pnand %p3929_p8, %p4675_p6 }
  0x59   : > { %p3938_p1 = por %p3937_p0, %p3936_p3 }
  0x5a   : > { %p3932_p7 = pneg %p3931_p5 }
  0x5c   : > { %p3939_p2 = pnand %p3938_p1, %p3932_p7 }
  0x5e   : > { %3942 = shalt.err (!%p3939_p2)
}
  0x5f   : > { %s3943_s6 = scalar_lea.vmem %s184_s24, 48  ;;  %p4676_p11 = pmov %p4675_p6 }
  0x60   : > { %p3944_p4 = scmp.ne.s32.totalorder %s184_s24, %s3943_s6  ;;  %s4037_s7 = smov [#allocation7]  }
  0x61   : > { %s3948_s8 = sshll.u32 %s4037_s7, 4  ;;  %s3949_s8 = int_to_ptr.vmem [resolvable:$false] %s3948_s8 }
  0x62   : > { %p3946_p13 = pnand %p3944_p4, %p4676_p11  ;;  %s3950_s10 = scalar_lea.vmem %s3949_s8, 96 }
  0x63   : > { %p3951_p6 = scmp.lt.s32.totalorder %s184_s24, %s3949_s8  ;;  %p3952_p5 = scmp.lt.s32.totalorder %s3950_s10, %s3943_s6 }
  0x64   : > { %p3947_p8 = pneg %p3946_p13 }
  0x65   : > { %p3953_p9 = por %p3952_p5, %p3951_p6 }
  0x67   : > { %p3954_p12 = pnand %p3953_p9, %p3947_p8 }
  0x69   : > { %3957 = shalt.err (!%p3954_p12)
}
  0x6a   : > { %3406 = dma.hbm_to_vmem [thread:$0]  (!%p4674_p10), %s4188_s17, 48, %s184_s24, %s4115_s30  }
  0x6b   : > { %p4677_p7 = scmp.ne.s32.totalorder %s4672_s4, 0 }
  0x6c   : > { %p4678_p3 = scmp.eq.s32.totalorder (!%p4677_p7), %s4144_s25, 0 }
  0x6d   : > { %192 = sbr.rel (%p4677_p7) target bundleno = 694 (0x2b6), region = 32 }
  0x74   : > { %4003 = dma.done.wait (%p4678_p3), [#allocation3], 1536   ;;  %p4679_p0 = pmov %p4678_p3 }
  0x75   : > { %s198_s1 = sand.u32 1, %s4144_s25   ;;  %s4234_s19 = sand.u32 1, %s4020_s13  }
  0x76   : > { %4005 = vsyncadd (%p4679_p0), [#allocation3], 4294965760  ;;  %s3383_s23 = smul.u32 2304, %s4234_s19  ;;  %s199_s11 = scalar_lea.sflag [#allocation6], %s198_s1 }
  0x77   : > { %p4680_p10 = scmp.ne.s32.totalorder %s4669_s28, 0 }
  0x78   : > { %s4237_s18 = scalar_lea.vmem [#allocation5], %s3383_s23 }
  0x79   : > { %4007 = dma.done.wait (%p4680_p10), %s199_s11, 36912  }
  0x7a   : > { %4009 = vsyncadd (%p4680_p10), %s199_s11, 4294930384  ;;  %v3456_v0 = vld [vmem:[%s4237_s18 + $0x4] ss:$12 sps:$4 sm:$0xff]   ;;  %v3460_v2 = vld [vmem:[%s4237_s18] ss:$12 sps:$4 sm:$0xff]   ;;  %s3384_s30 = smul.u32 3, %s4234_s19 }
  0x7b   : > { %v3458_v1 = vld [vmem:[%s4237_s18 + $0x184] ss:$12 sps:$4 sm:$0xff]   ;;  %2252 = vmatprep.subr.bf16.mxu1 %v3456_v0  ;;  %v3461_v3 = vld [vmem:[%s4237_s18 + $0x180] ss:$12 sps:$4 sm:$0xff]   ;;  %v3462_v4 = vld [vmem:[%s4237_s18 + $0x1c] ss:$12 sps:$4 sm:$0xff]  }
  0x7c   : > { %2295 = vmatprep.subr.bf16.mxu0 %v3458_v1  ;;  %2253 = vmatpush1.bf16.msra.mxu1 %v3460_v2  ;;  %v3464_v5 = vld [vmem:[%s4237_s18 + $0x19c] ss:$12 sps:$4 sm:$0xff]   ;;  %v3466_v6 = vld [vmem:[%s4237_s18 + $0x18] ss:$12 sps:$4 sm:$0xff]   ;;  %v3468_v8 = vld [vmem:[%s4237_s18 + $0x34] ss:$12 sps:$4 sm:$0xff]  }
  0x7d   : > { %2296 = vmatpush1.bf16.msra.mxu0 %v3461_v3  ;;  %2254 = vmatprep.subr.bf16.mxu1 %v3462_v4  ;;  %v3467_v7 = vld [vmem:[%s4237_s18 + $0x198] ss:$12 sps:$4 sm:$0xff]   ;;  %v3470_v9 = vld [vmem:[%s4237_s18 + $0x1b4] ss:$12 sps:$4 sm:$0xff]   ;;  %v3472_v10 = vld [vmem:[%s4237_s18 + $0x30] ss:$12 sps:$4 sm:$0xff]  }
  0x7e   : > { %2297 = vmatprep.subr.bf16.mxu0 %v3464_v5  ;;  %v3473_v11 = vld [vmem:[%s4237_s18 + $0x1b0] ss:$12 sps:$4 sm:$0xff]   ;;  %v3474_v12 = vld [vmem:[%s4237_s18 + $0x4c] ss:$12 sps:$4 sm:$0xff]   ;;  %v3478_v14 = vld [vmem:[%s4237_s18 + $0x48] ss:$12 sps:$4 sm:$0xff]  }
  0x7f   : > { %v3476_v13 = vld [vmem:[%s4237_s18 + $0x1cc] ss:$12 sps:$4 sm:$0xff]   ;;  %v3479_v15 = vld [vmem:[%s4237_s18 + $0x1c8] ss:$12 sps:$4 sm:$0xff]   ;;  %v3480_v16 = vld [vmem:[%s4237_s18 + $0x64] ss:$12 sps:$4 sm:$0xff]  }
  0x80   : > { %2255 = vmatpush1.bf16.msra.mxu1 %v3466_v6  ;;  %v3482_v17 = vld [vmem:[%s4237_s18 + $0x1e4] ss:$12 sps:$4 sm:$0xff]   ;;  %v3484_v18 = vld [vmem:[%s4237_s18 + $0x60] ss:$12 sps:$4 sm:$0xff]   ;;  %v3486_v20 = vld [vmem:[%s4237_s18 + $0x7c] ss:$12 sps:$4 sm:$0xff]  }
  0x81   : > { %2298 = vmatpush1.bf16.msra.mxu0 %v3467_v7  ;;  %2256 = vmatprep.subr.bf16.mxu1 %v3468_v8  ;;  %v3485_v19 = vld [vmem:[%s4237_s18 + $0x1e0] ss:$12 sps:$4 sm:$0xff]   ;;  %v3488_v21 = vld [vmem:[%s4237_s18 + $0x1fc] ss:$12 sps:$4 sm:$0xff]   ;;  %v3490_v22 = vld [vmem:[%s4237_s18 + $0x78] ss:$12 sps:$4 sm:$0xff]  }
  0x82   : > { %2299 = vmatprep.subr.bf16.mxu0 %v3470_v9  ;;  %v3491_v23 = vld [vmem:[%s4237_s18 + $0x1f8] ss:$12 sps:$4 sm:$0xff]   ;;  %v3492_v24 = vld [vmem:[%s4237_s18 + $0x94] ss:$12 sps:$4 sm:$0xff]   ;;  %v3496_v26 = vld [vmem:[%s4237_s18 + $0x90] ss:$12 sps:$4 sm:$0xff]  }
  0x83   : > { %v3494_v25 = vld [vmem:[%s4237_s18 + $0x214] ss:$12 sps:$4 sm:$0xff]   ;;  %v3497_v27 = vld [vmem:[%s4237_s18 + $0x210] ss:$12 sps:$4 sm:$0xff]   ;;  %v3498_v28 = vld [vmem:[%s4237_s18 + $0xac] ss:$12 sps:$4 sm:$0xff]  }
  0x84   : > { %2257 = vmatpush1.bf16.msra.mxu1 %v3472_v10  ;;  %v3500_v29 = vld [vmem:[%s4237_s18 + $0x22c] ss:$12 sps:$4 sm:$0xff]   ;;  %v3502_v30 = vld [vmem:[%s4237_s18 + $0xa8] ss:$12 sps:$4 sm:$0xff]   ;;  %v3504_v32 = vld [vmem:[%s4237_s18 + $0xc4] ss:$12 sps:$4 sm:$0xff]  }
  0x85   : > { %2300 = vmatpush1.bf16.msra.mxu0 %v3473_v11  ;;  %2258 = vmatprep.subr.bf16.mxu1 %v3474_v12  ;;  %v3503_v31 = vld [vmem:[%s4237_s18 + $0x228] ss:$12 sps:$4 sm:$0xff]   ;;  %v3506_v33 = vld [vmem:[%s4237_s18 + $0x244] ss:$12 sps:$4 sm:$0xff]   ;;  %v3508_v34 = vld [vmem:[%s4237_s18 + $0xc0] ss:$12 sps:$4 sm:$0xff]  }
  0x86   : > { %2301 = vmatprep.subr.bf16.mxu0 %v3476_v13  ;;  %v3509_v35 = vld [vmem:[%s4237_s18 + $0x240] ss:$12 sps:$4 sm:$0xff]   ;;  %v3510_v36 = vld [vmem:[%s4237_s18 + $0xdc] ss:$12 sps:$4 sm:$0xff]   ;;  %v3514_v38 = vld [vmem:[%s4237_s18 + $0xd8] ss:$12 sps:$4 sm:$0xff]  }
  0x87   : > { %v3512_v37 = vld [vmem:[%s4237_s18 + $0x25c] ss:$12 sps:$4 sm:$0xff]   ;;  %v3515_v39 = vld [vmem:[%s4237_s18 + $0x258] ss:$12 sps:$4 sm:$0xff]   ;;  %v3516_v40 = vld [vmem:[%s4237_s18 + $0xf4] ss:$12 sps:$4 sm:$0xff]  }
  0x88   : > { %2259 = vmatpush1.bf16.msra.mxu1 %v3478_v14  ;;  %v3518_v41 = vld [vmem:[%s4237_s18 + $0x274] ss:$12 sps:$4 sm:$0xff]   ;;  %v3520_v42 = vld [vmem:[%s4237_s18 + $0xf0] ss:$12 sps:$4 sm:$0xff]   ;;  %v3522_v44 = vld [vmem:[%s4237_s18 + $0x10c] ss:$12 sps:$4 sm:$0xff]  }
  0x89   : > { %2302 = vmatpush1.bf16.msra.mxu0 %v3479_v15  ;;  %2260 = vmatprep.subr.bf16.mxu1 %v3480_v16  ;;  %v3521_v43 = vld [vmem:[%s4237_s18 + $0x270] ss:$12 sps:$4 sm:$0xff]   ;;  %v3524_v45 = vld [vmem:[%s4237_s18 + $0x28c] ss:$12 sps:$4 sm:$0xff]   ;;  %v3526_v46 = vld [vmem:[%s4237_s18 + $0x108] ss:$12 sps:$4 sm:$0xff]  }
  0x8a   : > { %2303 = vmatprep.subr.bf16.mxu0 %v3482_v17  ;;  %v3527_v47 = vld [vmem:[%s4237_s18 + $0x288] ss:$12 sps:$4 sm:$0xff]   ;;  %v3528_v48 = vld [vmem:[%s4237_s18 + $0x124] ss:$12 sps:$4 sm:$0xff]   ;;  %v4293_v51 = vld [vmem:[#allocation2 + $0xc] ss:$48 sps:$4 sm:$0xff]  }
  0x8b   : > { %v3554_v49 = vld [vmem:[#allocation2 + $0x4] ss:$48 sps:$4 sm:$0xff]   ;;  %v3532_v52 = vld [vmem:[%s4237_s18 + $0x120] ss:$12 sps:$4 sm:$0xff]   ;;  %2327 = vmatprep.mubr.bf16.mxu0 %v4293_v51  ;;  %v3534_v54 = vld [vmem:[%s4237_s18 + $0x13c] ss:$12 sps:$4 sm:$0xff]  }
  0x8c   : > { %2261 = vmatpush1.bf16.msra.mxu1 %v3484_v18  ;;  %v3530_v50 = vld [vmem:[%s4237_s18 + $0x2a4] ss:$12 sps:$4 sm:$0xff]   ;;  %2284 = vmatprep.mubr.bf16.mxu1 %v3554_v49  ;;  %v3533_v53 = vld [vmem:[%s4237_s18 + $0x2a0] ss:$12 sps:$4 sm:$0xff]   ;;  %v3536_v55 = vld [vmem:[%s4237_s18 + $0x2bc] ss:$12 sps:$4 sm:$0xff]  }
  0x8d   : > { %2304 = vmatpush1.bf16.msra.mxu0 %v3485_v19  ;;  %2262 = vmatprep.subr.bf16.mxu1 %v3486_v20  ;;  %v3538_v56 = vld [vmem:[%s4237_s18 + $0x138] ss:$12 sps:$4 sm:$0xff]   ;;  %v3540_v58 = vld [vmem:[%s4237_s18 + $0x154] ss:$12 sps:$4 sm:$0xff]   ;;  %v3544_v60 = vld [vmem:[%s4237_s18 + $0x150] ss:$12 sps:$4 sm:$0xff]  }
  0x8e   : > { %2305 = vmatprep.subr.bf16.mxu0 %v3488_v21  ;;  %v3539_v57 = vld [vmem:[%s4237_s18 + $0x2b8] ss:$12 sps:$4 sm:$0xff]   ;;  %v3542_v59 = vld [vmem:[%s4237_s18 + $0x2d4] ss:$12 sps:$4 sm:$0xff]   ;;  %v3545_v61 = vld [vmem:[%s4237_s18 + $0x2d0] ss:$12 sps:$4 sm:$0xff]  }
  0x8f   : > { %v3546_v62 = vld [vmem:[%s4237_s18 + $0x16c] ss:$12 sps:$4 sm:$0xff]   ;;  %v3550_v0 = vld [vmem:[%s4237_s18 + $0x168] ss:$12 sps:$4 sm:$0xff]   ;;  %v3560_v2 = vld [vmem:[%s4237_s18 + $0x304] ss:$12 sps:$4 sm:$0xff]  }
  0x90   : > { %2263 = vmatpush1.bf16.msra.mxu1 %v3490_v22  ;;  %v3548_v63 = vld [vmem:[%s4237_s18 + $0x2ec] ss:$12 sps:$4 sm:$0xff]   ;;  %v3551_v1 = vld [vmem:[%s4237_s18 + $0x2e8] ss:$12 sps:$4 sm:$0xff]   ;;  %v4311_v3 = vld [vmem:[#allocation2] ss:$48 sps:$4 sm:$0xff]  }
  0x91   : > { %2306 = vmatpush1.bf16.msra.mxu0 %v3491_v23  ;;  %2264 = vmatprep.subr.bf16.mxu1 %v3492_v24  ;;  %v4313_v4 = vld [vmem:[#allocation2 + $0x8] ss:$48 sps:$4 sm:$0xff]   ;;  %v3558_v6 = vld [vmem:[%s4237_s18 + $0x300] ss:$12 sps:$4 sm:$0xff]   ;;  %v3568_v14 = vld [vmem:[%s4237_s18 + $0x330] ss:$12 sps:$4 sm:$0xff]  }
  0x92   : > { %2307 = vmatprep.subr.bf16.mxu0 %v3494_v25  ;;  %v3561_v5 = vld [vmem:[%s4237_s18 + $0xc8] ss:$12 sps:$4 sm:$0xff]   ;;  %v3566_v9 = vld [vmem:[%s4237_s18 + $0xe0] ss:$12 sps:$4 sm:$0xff]   ;;  %v3563_v10 = vld [vmem:[%s4237_s18 + $0x318] ss:$12 sps:$4 sm:$0xff]  }
  0x93   : > { %v3562_v7 = vld [vmem:[%s4237_s18 + $0x8] ss:$12 sps:$4 sm:$0xff]   ;;  %v3567_v11 = vld [vmem:[%s4237_s18 + $0x20] ss:$12 sps:$4 sm:$0xff]   ;;  %v3571_v13 = vld [vmem:[%s4237_s18 + $0xf8] ss:$12 sps:$4 sm:$0xff]  }
  0x94   : > { %2265 = vmatpush1.bf16.msra.mxu1 %v3496_v26  ;;  %v3565_v8 = vld [vmem:[%s4237_s18 + $0x31c] ss:$12 sps:$4 sm:$0xff]   ;;  %v3570_v12 = vld [vmem:[%s4237_s18 + $0x334] ss:$12 sps:$4 sm:$0xff]   ;;  %v3572_v15 = vld [vmem:[%s4237_s18 + $0x38] ss:$12 sps:$4 sm:$0xff]  }
  0x95   : > { %2308 = vmatpush1.bf16.msra.mxu0 %v3497_v27  ;;  %2266 = vmatprep.subr.bf16.mxu1 %v3498_v28  ;;  %v3575_v16 = vld [vmem:[%s4237_s18 + $0x34c] ss:$12 sps:$4 sm:$0xff]   ;;  %v3576_v17 = vld [vmem:[%s4237_s18 + $0x110] ss:$12 sps:$4 sm:$0xff]   ;;  %v3573_v18 = vld [vmem:[%s4237_s18 + $0x348] ss:$12 sps:$4 sm:$0xff]  }
  0x96   : > { %2309 = vmatprep.subr.bf16.mxu0 %v3500_v29  ;;  %v3577_v19 = vld [vmem:[%s4237_s18 + $0x50] ss:$12 sps:$4 sm:$0xff]   ;;  %v3581_v21 = vld [vmem:[%s4237_s18 + $0x128] ss:$12 sps:$4 sm:$0xff]   ;;  %v3578_v22 = vld [vmem:[%s4237_s18 + $0x360] ss:$12 sps:$4 sm:$0xff]  }
  0x97   : > { %v3580_v20 = vld [vmem:[%s4237_s18 + $0x364] ss:$12 sps:$4 sm:$0xff]   ;;  %v3582_v23 = vld [vmem:[%s4237_s18 + $0x68] ss:$12 sps:$4 sm:$0xff]   ;;  %v3586_v25 = vld [vmem:[%s4237_s18 + $0x140] ss:$12 sps:$4 sm:$0xff]  }
  0x98   : > { %2267 = vmatpush1.bf16.msra.mxu1 %v3502_v30  ;;  %v3585_v24 = vld [vmem:[%s4237_s18 + $0x37c] ss:$12 sps:$4 sm:$0xff]   ;;  %v3583_v26 = vld [vmem:[%s4237_s18 + $0x378] ss:$12 sps:$4 sm:$0xff]   ;;  %v3587_v27 = vld [vmem:[%s4237_s18 + $0x80] ss:$12 sps:$4 sm:$0xff]  }
  0x99   : > { %2310 = vmatpush1.bf16.msra.mxu0 %v3503_v31  ;;  %2268 = vmatprep.subr.bf16.mxu1 %v3504_v32  ;;  %v3590_v28 = vld [vmem:[%s4237_s18 + $0x394] ss:$12 sps:$4 sm:$0xff]   ;;  %v3591_v29 = vld [vmem:[%s4237_s18 + $0x158] ss:$12 sps:$4 sm:$0xff]   ;;  %v3588_v30 = vld [vmem:[%s4237_s18 + $0x390] ss:$12 sps:$4 sm:$0xff]  }
  0x9a   : > { %2311 = vmatprep.subr.bf16.mxu0 %v3506_v33  ;;  %v3592_v31 = vld [vmem:[%s4237_s18 + $0x98] ss:$12 sps:$4 sm:$0xff]   ;;  %v3596_v33 = vld [vmem:[%s4237_s18 + $0x170] ss:$12 sps:$4 sm:$0xff]   ;;  %s211_s28 = scalar_lea.vmem [#allocation7], %s3384_s30  ;;  %s3385_s4 = smul.u32 48, %s4234_s19 }
  0x9b   : > { %v3595_v32 = vld [vmem:[%s4237_s18 + $0x3ac] ss:$12 sps:$4 sm:$0xff]   ;;  %s3224_s22 = smul.u32 384, %s4144_s25  ;;  %s2793_s21 = scalar_lea.sflag [#allocation4], %s4234_s19 }
  0x9c   : > { %2269 = vmatpush1.bf16.msra.mxu1 %v3508_v34  ;;  %v3593_v34 = vld [vmem:[%s4237_s18 + $0x3a8] ss:$12 sps:$4 sm:$0xff]   ;;  %s4591_s17 = scalar_lea.vmem [#allocation8], %s3385_s4  ;;  %p4681_p2 = scmp.ne.s32.totalorder %s4670_s27, 0 }
  0x9d   : > { %2312 = vmatpush1.bf16.msra.mxu0 %v3509_v35  ;;  %2270 = vmatprep.subr.bf16.mxu1 %v3510_v36  ;;  %v3597_v35 = vld [vmem:[%s4237_s18 + $0xb0] ss:$12 sps:$4 sm:$0xff]   ;;  %s2806_s20 = sshll.u32 %s4591_s17, 4  ;;  %s4607_s26 = scalar_lea.hbm %s4657_s3, %s3224_s22  ;;  %s4601_s20 = int_to_ptr.vmem [resolvable:$true] %s2806_s20 }
  0x9e   : > { %2313 = vmatprep.subr.bf16.mxu0 %v3512_v37  ;;  %v3600_v36 = vld [vmem:[%s4237_s18 + $0x3c4] ss:$12 sps:$4 sm:$0xff]   ;;  %v3601_v37 = vld [vmem:[%s4237_s18 + $0x248] ss:$12 sps:$4 sm:$0xff]   ;;  %s3958_s5 = scalar_lea.vmem %s4601_s20, 768  ;;  %s4038_s9 = smov [#allocation8]  }
  0x9f   : > { %p3959_p1 = scmp.ne.s32.totalorder %s4601_s20, %s3958_s5  ;;  %s3962_s6 = sshll.u32 %s4038_s9, 4  ;;  %s3963_s6 = int_to_ptr.vmem [resolvable:$false] %s3962_s6 }
  0xa0   : > { %2271 = vmatpush1.bf16.msra.mxu1 %v3514_v38  ;;  %v3598_v38 = vld [vmem:[%s4237_s18 + $0x3c0] ss:$12 sps:$4 sm:$0xff]   ;;  %s3964_s7 = scalar_lea.vmem %s3963_s6, 1536  ;;  %p3965_p13 = scmp.lt.s32.totalorder %s4601_s20, %s3963_s6 }
  0xa1   : > { %2314 = vmatpush1.bf16.msra.mxu0 %v3515_v39  ;;  %2272 = vmatprep.subr.bf16.mxu1 %v3516_v40  ;;  %v3602_v39 = vld [vmem:[%s4237_s18 + $0x188] ss:$12 sps:$4 sm:$0xff]   ;;  %p3960_p4 = pnand %p3959_p1, %p4681_p2  ;;  %p3966_p8 = scmp.lt.s32.totalorder %s3964_s7, %s3958_s5 }
  0xa2   : > { %2315 = vmatprep.subr.bf16.mxu0 %v3518_v41  ;;  %v3605_v40 = vld [vmem:[%s4237_s18 + $0x3dc] ss:$12 sps:$4 sm:$0xff]   ;;  %v3606_v41 = vld [vmem:[%s4237_s18 + $0x260] ss:$12 sps:$4 sm:$0xff]  }
  0xa3   : > { %p3961_p11 = pneg %p3960_p4  ;;  %p3967_p6 = por %p3966_p8, %p3965_p13 }
  0xa4   : > { %2273 = vmatpush1.bf16.msra.mxu1 %v3520_v42  ;;  %v3603_v42 = vld [vmem:[%s4237_s18 + $0x3d8] ss:$12 sps:$4 sm:$0xff]  }
  0xa5   : > { %2316 = vmatpush1.bf16.msra.mxu0 %v3521_v43  ;;  %2274 = vmatprep.subr.bf16.mxu1 %v3522_v44  ;;  %v3607_v43 = vld [vmem:[%s4237_s18 + $0x1a0] ss:$12 sps:$4 sm:$0xff]   ;;  %v4357_v44 = vld [vmem:[#allocation2 + $0x14] ss:$48 sps:$4 sm:$0xff]   ;;  %p3968_p5 = pnand %p3967_p6, %p3961_p11 }
  0xa6   : > { %2317 = vmatprep.subr.bf16.mxu0 %v3524_v45  ;;  %v3610_v45 = vld [vmem:[%s4237_s18 + $0x3f4] ss:$12 sps:$4 sm:$0xff]  }
  0xa8   : > { %2275 = vmatpush1.bf16.msra.mxu1 %v3526_v46  ;;  %v3611_v46 = vld [vmem:[%s4237_s18 + $0x278] ss:$12 sps:$4 sm:$0xff]  }
  0xa9   : > { %2318 = vmatpush1.bf16.msra.mxu0 %v3527_v47  ;;  %2276 = vmatprep.subr.bf16.mxu1 %v3528_v48  ;;  %v3608_v47 = vld [vmem:[%s4237_s18 + $0x3f0] ss:$12 sps:$4 sm:$0xff]   ;;  %v3612_v48 = vld [vmem:[%s4237_s18 + $0x1b8] ss:$12 sps:$4 sm:$0xff]  }
  0xaa   : > { %2319 = vmatprep.subr.bf16.mxu0 %v3530_v50  ;;  %v3616_v50 = vld [vmem:[%s4237_s18 + $0x290] ss:$12 sps:$4 sm:$0xff]  }
  0xac   : > { %2277 = vmatpush1.bf16.msra.mxu1 %v3532_v52  ;;  %v3613_v52 = vld [vmem:[%s4237_s18 + $0x408] ss:$12 sps:$4 sm:$0xff]  }
  0xad   : > { %2320 = vmatpush1.bf16.msra.mxu0 %v3533_v53  ;;  %2278 = vmatprep.subr.bf16.mxu1 %v3534_v54  ;;  %v3617_v53 = vld [vmem:[%s4237_s18 + $0x1d0] ss:$12 sps:$4 sm:$0xff]   ;;  %v3621_v54 = vld [vmem:[%s4237_s18 + $0x2a8] ss:$12 sps:$4 sm:$0xff]  }
  0xae   : > { %2321 = vmatprep.subr.bf16.mxu0 %v3536_v55  ;;  %v3618_v55 = vld [vmem:[%s4237_s18 + $0x420] ss:$12 sps:$4 sm:$0xff]  }
  0xb0   : > { %2279 = vmatpush1.bf16.msra.mxu1 %v3538_v56  ;;  %v3622_v56 = vld [vmem:[%s4237_s18 + $0x1e8] ss:$12 sps:$4 sm:$0xff]  }
  0xb1   : > { %2322 = vmatpush1.bf16.msra.mxu0 %v3539_v57  ;;  %2280 = vmatprep.subr.bf16.mxu1 %v3540_v58  ;;  %v3625_v57 = vld [vmem:[%s4237_s18 + $0x43c] ss:$12 sps:$4 sm:$0xff]   ;;  %v3626_v58 = vld [vmem:[%s4237_s18 + $0x2c0] ss:$12 sps:$4 sm:$0xff]  }
  0xb2   : > { %2323 = vmatprep.subr.bf16.mxu0 %v3542_v59  ;;  %v3623_v59 = vld [vmem:[%s4237_s18 + $0x438] ss:$12 sps:$4 sm:$0xff]  }
  0xb4   : > { %2281 = vmatpush1.bf16.msra.mxu1 %v3544_v60  ;;  %v3627_v60 = vld [vmem:[%s4237_s18 + $0x200] ss:$12 sps:$4 sm:$0xff]  }
  0xb5   : > { %2324 = vmatpush1.bf16.msra.mxu0 %v3545_v61  ;;  %2282 = vmatprep.subr.bf16.mxu1 %v3546_v62  ;;  %v3630_v61 = vld [vmem:[%s4237_s18 + $0x454] ss:$12 sps:$4 sm:$0xff]   ;;  %v3631_v62 = vld [vmem:[%s4237_s18 + $0x2d8] ss:$12 sps:$4 sm:$0xff]  }
  0xb6   : > { %2325 = vmatprep.subr.bf16.mxu0 %v3548_v63  ;;  %v3628_v63 = vld [vmem:[%s4237_s18 + $0x450] ss:$12 sps:$4 sm:$0xff]  }
  0xb8   : > { %2283 = vmatpush1.bf16.msra.mxu1 %v3550_v0  ;;  %v3632_v0 = vld [vmem:[%s4237_s18 + $0x218] ss:$12 sps:$4 sm:$0xff]  }
  0xb9   : > { %2326 = vmatpush1.bf16.msra.mxu0 %v3551_v1  ;;  %3225 = vmatprep.subr.bf16.mxu1 %v3561_v5  ;;  %v3635_v1 = vld [vmem:[%s4237_s18 + $0x46c] ss:$12 sps:$4 sm:$0xff]   ;;  %v3637_v5 = vld [vmem:[%s4237_s18 + $0x230] ss:$12 sps:$4 sm:$0xff]  }
  0xba   : > { %2338 = vmatprep.subr.bf16.mxu0 %v3560_v2  ;;  %v3636_v2 = vld [vmem:[%s4237_s18 + $0x2f0] ss:$12 sps:$4 sm:$0xff]  }
  0xbb   : > { %2285 = vmatmul.mubr.bf16.vlgmr.msra.gmra.mrb[0].mxu1 %v4311_v3 }
  0xbc   : > { %2328 = vmatmul.mubr.bf16.vlgmr.msra.gmra.mrb[0].mxu0 %v4313_v4  ;;  %3226 = vmatpush3.bf16.msra.mxu1 %v3562_v7  ;;  %v3644_v7 = vld [vmem:[%s4237_s18 + $0x3c8] ss:$12 sps:$4 sm:$0xff]  }
  0xbd   : > { %2339 = vmatpush1.bf16.msra.mxu0 %v3558_v6  ;;  %3227 = vmatprep.subr.bf16.mxu1 %v3566_v9  ;;  %v3643_v6 = vld [vmem:[%s4237_s18 + $0x484] ss:$12 sps:$4 sm:$0xff]   ;;  %v3641_v9 = vld [vmem:[%s4237_s18 + $0x480] ss:$12 sps:$4 sm:$0xff]  }
  0xbe   : > { %2340 = vmatprep.subr.bf16.mxu0 %v3565_v8  ;;  %2542 = vmatprep.mubr.bf16.mxu1 %v3554_v49  ;;  %v3615_v49 = vld [vmem:[%s4237_s18 + $0x40c] ss:$12 sps:$4 sm:$0xff]   ;;  %v4387_v8 = vld [vmem:[#allocation2 + $0x10] ss:$48 sps:$4 sm:$0xff]  }
  0xbf   : > { %2370 = vmatprep.mubr.bf16.mxu0 %v4357_v44 }
  0xc0   : > { %3228 = vmatpush3.bf16.msra.mxu1 %v3567_v11  ;;  %v3648_v11 = vld [vmem:[%s4237_s18 + $0x49c] ss:$12 sps:$4 sm:$0xff]  }
  0xc1   : > { %2341 = vmatpush1.bf16.msra.mxu0 %v3563_v10  ;;  %3229 = vmatprep.subr.bf16.mxu1 %v3571_v13  ;;  %v3645_v10 = vld [vmem:[%s4237_s18 + $0x308] ss:$12 sps:$4 sm:$0xff]   ;;  %v3646_v13 = vld [vmem:[%s4237_s18 + $0x498] ss:$12 sps:$4 sm:$0xff]  }
  0xc2   : > { %2342 = vmatprep.subr.bf16.mxu0 %v3570_v12  ;;  %v3649_v12 = vld [vmem:[%s4237_s18 + $0x3e0] ss:$12 sps:$4 sm:$0xff]  }
  0xc4   : > { %3230 = vmatpush3.bf16.msra.mxu1 %v3572_v15  ;;  %v3653_v15 = vld [vmem:[%s4237_s18 + $0x4b4] ss:$12 sps:$4 sm:$0xff]  }
  0xc5   : > { %2343 = vmatpush1.bf16.msra.mxu0 %v3568_v14  ;;  %3231 = vmatprep.subr.bf16.mxu1 %v3576_v17  ;;  %v3650_v14 = vld [vmem:[%s4237_s18 + $0x320] ss:$12 sps:$4 sm:$0xff]   ;;  %v3651_v17 = vld [vmem:[%s4237_s18 + $0x4b0] ss:$12 sps:$4 sm:$0xff]  }
  0xc6   : > { %2344 = vmatprep.subr.bf16.mxu0 %v3575_v16  ;;  %v3654_v16 = vld [vmem:[%s4237_s18 + $0x3f8] ss:$12 sps:$4 sm:$0xff]  }
  0xc8   : > { %3232 = vmatpush3.bf16.msra.mxu1 %v3577_v19  ;;  %v3659_v19 = vld [vmem:[%s4237_s18 + $0x410] ss:$12 sps:$4 sm:$0xff]  }
  0xc9   : > { %2345 = vmatpush1.bf16.msra.mxu0 %v3573_v18  ;;  %3233 = vmatprep.subr.bf16.mxu1 %v3581_v21  ;;  %v3655_v18 = vld [vmem:[%s4237_s18 + $0x338] ss:$12 sps:$4 sm:$0xff]   ;;  %v3660_v21 = vld [vmem:[%s4237_s18 + $0x350] ss:$12 sps:$4 sm:$0xff]  }
  0xca   : > { %2346 = vmatprep.subr.bf16.mxu0 %v3580_v20  ;;  %v3656_v20 = vld [vmem:[%s4237_s18 + $0x4c8] ss:$12 sps:$4 sm:$0xff]  }
  0xcc   : > { %3234 = vmatpush3.bf16.msra.mxu1 %v3582_v23  ;;  %v3664_v23 = vld [vmem:[%s4237_s18 + $0x428] ss:$12 sps:$4 sm:$0xff]  }
  0xcd   : > { %2347 = vmatpush1.bf16.msra.mxu0 %v3578_v22  ;;  %3235 = vmatprep.subr.bf16.mxu1 %v3586_v25  ;;  %v3663_v22 = vld [vmem:[%s4237_s18 + $0x4e4] ss:$12 sps:$4 sm:$0xff]   ;;  %v3665_v25 = vld [vmem:[%s4237_s18 + $0x368] ss:$12 sps:$4 sm:$0xff]  }
  0xce   : > { %2348 = vmatprep.subr.bf16.mxu0 %v3585_v24  ;;  %v3661_v24 = vld [vmem:[%s4237_s18 + $0x4e0] ss:$12 sps:$4 sm:$0xff]  }
  0xd0   : > { %3236 = vmatpush3.bf16.msra.mxu1 %v3587_v27  ;;  %v3669_v27 = vld [vmem:[%s4237_s18 + $0x440] ss:$12 sps:$4 sm:$0xff]  }
  0xd1   : > { %2349 = vmatpush1.bf16.msra.mxu0 %v3583_v26  ;;  %3237 = vmatprep.subr.bf16.mxu1 %v3591_v29  ;;  %v3668_v26 = vld [vmem:[%s4237_s18 + $0x4fc] ss:$12 sps:$4 sm:$0xff]   ;;  %v3670_v29 = vld [vmem:[%s4237_s18 + $0x380] ss:$12 sps:$4 sm:$0xff]  }
  0xd2   : > { %2350 = vmatprep.subr.bf16.mxu0 %v3590_v28  ;;  %v3666_v28 = vld [vmem:[%s4237_s18 + $0x4f8] ss:$12 sps:$4 sm:$0xff]  }
  0xd4   : > { %3238 = vmatpush3.bf16.msra.mxu1 %v3592_v31  ;;  %v3674_v31 = vld [vmem:[%s4237_s18 + $0x458] ss:$12 sps:$4 sm:$0xff]  }
  0xd5   : > { %2351 = vmatpush1.bf16.msra.mxu0 %v3588_v30  ;;  %3239 = vmatprep.subr.bf16.mxu1 %v3596_v33  ;;  %v3673_v30 = vld [vmem:[%s4237_s18 + $0x514] ss:$12 sps:$4 sm:$0xff]   ;;  %v3675_v33 = vld [vmem:[%s4237_s18 + $0x398] ss:$12 sps:$4 sm:$0xff]  }
  0xd6   : > { %2352 = vmatprep.subr.bf16.mxu0 %v3595_v32  ;;  %v3671_v32 = vld [vmem:[%s4237_s18 + $0x510] ss:$12 sps:$4 sm:$0xff]  }
  0xd8   : > { %3240 = vmatpush3.bf16.msra.mxu1 %v3597_v35  ;;  %v3679_v35 = vld [vmem:[%s4237_s18 + $0x470] ss:$12 sps:$4 sm:$0xff]  }
  0xd9   : > { %2353 = vmatpush1.bf16.msra.mxu0 %v3593_v34  ;;  %3247 = vmatprep.subr.bf16.mxu1 %v3601_v37  ;;  %v3678_v34 = vld [vmem:[%s4237_s18 + $0x52c] ss:$12 sps:$4 sm:$0xff]   ;;  %v3676_v37 = vld [vmem:[%s4237_s18 + $0x528] ss:$12 sps:$4 sm:$0xff]  }
  0xda   : > { %2354 = vmatprep.subr.bf16.mxu0 %v3600_v36  ;;  %v3723_v36 = vld [vmem:[#allocation2 + $0x1c] ss:$48 sps:$4 sm:$0xff]  }
  0xdb   : > { %2543 = vmatmul.mubr.bf16.vlgmr.msra.gmra.mrb[4].mxu1 %v4311_v3  ;;  %v3633_v3 = vld [vmem:[%s4237_s18 + $0x468] ss:$12 sps:$4 sm:$0xff]  }
  0xdc   : > { %3248 = vmatpush3.bf16.msra.mxu1 %v3602_v39  ;;  %2583 = vmatprep.mubr.bf16.mxu1 %v4293_v51  ;;  %v3620_v51 = vld [vmem:[%s4237_s18 + $0x424] ss:$12 sps:$4 sm:$0xff]  }
  0xdd   : > { %2355 = vmatpush1.bf16.msra.mxu0 %v3598_v38  ;;  %3249 = vmatprep.subr.bf16.mxu1 %v3606_v41  ;;  %v3680_v38 = vld [vmem:[%s4237_s18 + $0x3b0] ss:$12 sps:$4 sm:$0xff]   ;;  %v3681_v41 = vld [vmem:[%s4237_s18 + $0x540] ss:$12 sps:$4 sm:$0xff]  }
  0xde   : > { %2356 = vmatprep.subr.bf16.mxu0 %v3605_v40  ;;  %v3683_v39 = vld [vmem:[%s4237_s18 + $0x544] ss:$12 sps:$4 sm:$0xff]   ;;  %v3684_v40 = vld [vmem:[%s4237_s18 + $0x548] ss:$12 sps:$4 sm:$0xff]  }
  0xe0   : > { %3250 = vmatpush3.bf16.msra.mxu1 %v3607_v43  ;;  %v3688_v43 = vld [vmem:[%s4237_s18 + $0x55c] ss:$12 sps:$4 sm:$0xff]  }
  0xe1   : > { %2357 = vmatpush1.bf16.msra.mxu0 %v3603_v42  ;;  %3251 = vmatprep.subr.bf16.mxu1 %v3611_v46  ;;  %v3685_v42 = vld [vmem:[%s4237_s18 + $0x488] ss:$12 sps:$4 sm:$0xff]   ;;  %v3690_v46 = vld [vmem:[%s4237_s18 + $0x4a0] ss:$12 sps:$4 sm:$0xff]  }
  0xe2   : > { %2358 = vmatprep.subr.bf16.mxu0 %v3610_v45  ;;  %v3686_v45 = vld [vmem:[%s4237_s18 + $0x558] ss:$12 sps:$4 sm:$0xff]  }
  0xe4   : > { %3252 = vmatpush3.bf16.msra.mxu1 %v3612_v48  ;;  %v3694_v48 = vld [vmem:[%s4237_s18 + $0x578] ss:$12 sps:$4 sm:$0xff]  }
  0xe5   : > { %2359 = vmatpush1.bf16.msra.mxu0 %v3608_v47  ;;  %3253 = vmatprep.subr.bf16.mxu1 %v3616_v50  ;;  %v3693_v47 = vld [vmem:[%s4237_s18 + $0x574] ss:$12 sps:$4 sm:$0xff]   ;;  %v3695_v50 = vld [vmem:[%s4237_s18 + $0x4b8] ss:$12 sps:$4 sm:$0xff]  }
  0xe6   : > { %2360 = vmatprep.subr.bf16.mxu0 %v3615_v49  ;;  %v3691_v49 = vld [vmem:[%s4237_s18 + $0x570] ss:$12 sps:$4 sm:$0xff]  }
  0xe8   : > { %3254 = vmatpush3.bf16.msra.mxu1 %v3617_v53  ;;  %v3699_v53 = vld [vmem:[%s4237_s18 + $0x590] ss:$12 sps:$4 sm:$0xff]  }
  0xe9   : > { %2361 = vmatpush1.bf16.msra.mxu0 %v3613_v52  ;;  %3255 = vmatprep.subr.bf16.mxu1 %v3621_v54  ;;  %v3698_v52 = vld [vmem:[%s4237_s18 + $0x58c] ss:$12 sps:$4 sm:$0xff]   ;;  %v3700_v54 = vld [vmem:[%s4237_s18 + $0x4d0] ss:$12 sps:$4 sm:$0xff]  }
  0xea   : > { %2362 = vmatprep.subr.bf16.mxu0 %v3620_v51  ;;  %v3696_v51 = vld [vmem:[%s4237_s18 + $0x588] ss:$12 sps:$4 sm:$0xff]  }
  0xec   : > { %3256 = vmatpush3.bf16.msra.mxu1 %v3622_v56  ;;  %v3704_v56 = vld [vmem:[%s4237_s18 + $0x5a8] ss:$12 sps:$4 sm:$0xff]  }
  0xed   : > { %2363 = vmatpush1.bf16.msra.mxu0 %v3618_v55  ;;  %3257 = vmatprep.subr.bf16.mxu1 %v3626_v58  ;;  %v3703_v55 = vld [vmem:[%s4237_s18 + $0x5a4] ss:$12 sps:$4 sm:$0xff]   ;;  %v3705_v58 = vld [vmem:[%s4237_s18 + $0x4e8] ss:$12 sps:$4 sm:$0xff]  }
  0xee   : > { %2364 = vmatprep.subr.bf16.mxu0 %v3625_v57  ;;  %v3701_v57 = vld [vmem:[%s4237_s18 + $0x5a0] ss:$12 sps:$4 sm:$0xff]  }
  0xf0   : > { %3258 = vmatpush3.bf16.msra.mxu1 %v3627_v60  ;;  %v3709_v60 = vld [vmem:[%s4237_s18 + $0x5c0] ss:$12 sps:$4 sm:$0xff]  }
  0xf1   : > { %2365 = vmatpush1.bf16.msra.mxu0 %v3623_v59  ;;  %3259 = vmatprep.subr.bf16.mxu1 %v3631_v62  ;;  %v3708_v59 = vld [vmem:[%s4237_s18 + $0x5bc] ss:$12 sps:$4 sm:$0xff]   ;;  %v3710_v62 = vld [vmem:[%s4237_s18 + $0x500] ss:$12 sps:$4 sm:$0xff]  }
  0xf2   : > { %2366 = vmatprep.subr.bf16.mxu0 %v3630_v61  ;;  %v3706_v61 = vld [vmem:[%s4237_s18 + $0x5b8] ss:$12 sps:$4 sm:$0xff]  }
  0xf4   : > { %3260 = vmatpush3.bf16.msra.mxu1 %v3632_v0  ;;  %v3714_v0 = vld [vmem:[%s4237_s18 + $0x5d8] ss:$12 sps:$4 sm:$0xff]  }
  0xf5   : > { %2367 = vmatpush1.bf16.msra.mxu0 %v3628_v63  ;;  %3261 = vmatprep.subr.bf16.mxu1 %v3636_v2  ;;  %v3713_v63 = vld [vmem:[%s4237_s18 + $0x5d4] ss:$12 sps:$4 sm:$0xff]   ;;  %v3715_v2 = vld [vmem:[%s4237_s18 + $0x518] ss:$12 sps:$4 sm:$0xff]  }
  0xf6   : > { %2368 = vmatprep.subr.bf16.mxu0 %v3635_v1  ;;  %v3711_v1 = vld [vmem:[%s4237_s18 + $0x5d0] ss:$12 sps:$4 sm:$0xff]  }
  0xf8   : > { %3262 = vmatpush3.bf16.msra.mxu1 %v3637_v5  ;;  %v3719_v5 = vld [vmem:[%s4237_s18 + $0x5f0] ss:$12 sps:$4 sm:$0xff]  }
  0xf9   : > { %2369 = vmatpush1.bf16.msra.mxu0 %v3633_v3  ;;  %3269 = vmatprep.subr.bf16.mxu1 %v3644_v7  ;;  %v3718_v3 = vld [vmem:[%s4237_s18 + $0x5ec] ss:$12 sps:$4 sm:$0xff]   ;;  %v3720_v7 = vld [vmem:[%s4237_s18 + $0x530] ss:$12 sps:$4 sm:$0xff]  }
  0xfa   : > { %2381 = vmatprep.subr.bf16.mxu0 %v3643_v6  ;;  %v3716_v6 = vld [vmem:[%s4237_s18 + $0x5e8] ss:$12 sps:$4 sm:$0xff]  }
  0xfb   : > { %2584 = vmatmul.mubr.bf16.vlgmr.msra.gmra.mrb[8].mxu1 %v4313_v4  ;;  %v3658_v4 = vld [vmem:[%s4237_s18 + $0x4cc] ss:$12 sps:$4 sm:$0xff]  }
  0xfc   : > { %2371 = vmatmul.mubr.bf16.vlgmr.msra.gmra.mrb[0].mxu0 %v4387_v8  ;;  %3270 = vmatpush3.bf16.msra.mxu1 %v3645_v10  ;;  %v3721_v10 = vld [vmem:[#allocation2 + $0x18] ss:$48 sps:$4 sm:$0xff]  }
  0xfd   : > { %2382 = vmatpush1.bf16.msra.mxu0 %v3641_v9  ;;  %3271 = vmatprep.subr.bf16.mxu1 %v3649_v12  ;;  %v3727_v9 = vld [vmem:[%s4237_s18 + $0x6c8] ss:$12 sps:$4 sm:$0xff]  }
  0xfe   : > { %2383 = vmatprep.subr.bf16.mxu0 %v3648_v11  ;;  %2624 = vmatprep.mubr.bf16.mxu1 %v4357_v44  ;;  %v3689_v44 = vld [vmem:[%s4237_s18 + $0x560] ss:$12 sps:$4 sm:$0xff]   ;;  %v3728_v12 = vld [vmem:[%s4237_s18 + $0x608] ss:$12 sps:$4 sm:$0xff]  }
  0xff   : > { %2413 = vmatprep.mubr.bf16.mxu0 %v3723_v36  ;;  %v3724_v11 = vld [vmem:[%s4237_s18 + $0x600] ss:$12 sps:$4 sm:$0xff]  }
 0x100   : > { %3272 = vmatpush3.bf16.msra.mxu1 %v3650_v14  ;;  %v3732_v14 = vld [vmem:[%s4237_s18 + $0x6e0] ss:$12 sps:$4 sm:$0xff]  }
 0x101   : > { %2384 = vmatpush1.bf16.msra.mxu0 %v3646_v13  ;;  %3273 = vmatprep.subr.bf16.mxu1 %v3654_v16  ;;  %v3731_v13 = vld [vmem:[%s4237_s18 + $0x61c] ss:$12 sps:$4 sm:$0xff]   ;;  %v3766_v16 = vld [vmem:[#allocation2 + $0x24] ss:$48 sps:$4 sm:$0xff]  }
 0x102   : > { %2385 = vmatprep.subr.bf16.mxu0 %v3653_v15  ;;  %v3729_v15 = vld [vmem:[%s4237_s18 + $0x618] ss:$12 sps:$4 sm:$0xff]  }
 0x104   : > { %3274 = vmatpush3.bf16.msra.mxu1 %v3655_v18  ;;  %v3736_v18 = vld [vmem:[%s4237_s18 + $0x634] ss:$12 sps:$4 sm:$0xff]  }
 0x105   : > { %2386 = vmatpush1.bf16.msra.mxu0 %v3651_v17  ;;  %3275 = vmatprep.subr.bf16.mxu1 %v3659_v19  ;;  %v3733_v17 = vld [vmem:[%s4237_s18 + $0x620] ss:$12 sps:$4 sm:$0xff]   ;;  %v3734_v19 = vld [vmem:[%s4237_s18 + $0x630] ss:$12 sps:$4 sm:$0xff]  }
 0x106   : > { %2387 = vmatprep.subr.bf16.mxu0 %v3658_v4  ;;  %v3737_v4 = vld [vmem:[%s4237_s18 + $0x6f8] ss:$12 sps:$4 sm:$0xff]  }
 0x108   : > { %3276 = vmatpush3.bf16.msra.mxu1 %v3660_v21  ;;  %v3741_v21 = vld [vmem:[%s4237_s18 + $0x64c] ss:$12 sps:$4 sm:$0xff]  }
 0x109   : > { %2388 = vmatpush1.bf16.msra.mxu0 %v3656_v20  ;;  %3277 = vmatprep.subr.bf16.mxu1 %v3664_v23  ;;  %v3738_v20 = vld [vmem:[%s4237_s18 + $0x638] ss:$12 sps:$4 sm:$0xff]   ;;  %v3739_v23 = vld [vmem:[%s4237_s18 + $0x648] ss:$12 sps:$4 sm:$0xff]  }
 0x10a   : > { %2389 = vmatprep.subr.bf16.mxu0 %v3663_v22  ;;  %v3742_v22 = vld [vmem:[%s4237_s18 + $0x710] ss:$12 sps:$4 sm:$0xff]  }
 0x10c   : > { %3278 = vmatpush3.bf16.msra.mxu1 %v3665_v25  ;;  %v3746_v25 = vld [vmem:[%s4237_s18 + $0x664] ss:$12 sps:$4 sm:$0xff]  }
 0x10d   : > { %2390 = vmatpush1.bf16.msra.mxu0 %v3661_v24  ;;  %3279 = vmatprep.subr.bf16.mxu1 %v3669_v27  ;;  %v3743_v24 = vld [vmem:[%s4237_s18 + $0x650] ss:$12 sps:$4 sm:$0xff]   ;;  %v3744_v27 = vld [vmem:[%s4237_s18 + $0x660] ss:$12 sps:$4 sm:$0xff]  }
 0x10e   : > { %2391 = vmatprep.subr.bf16.mxu0 %v3668_v26  ;;  %v3747_v26 = vld [vmem:[%s4237_s18 + $0x728] ss:$12 sps:$4 sm:$0xff]  }
 0x110   : > { %3280 = vmatpush3.bf16.msra.mxu1 %v3670_v29  ;;  %v3751_v29 = vld [vmem:[%s4237_s18 + $0x67c] ss:$12 sps:$4 sm:$0xff]  }
 0x111   : > { %2392 = vmatpush1.bf16.msra.mxu0 %v3666_v28  ;;  %3281 = vmatprep.subr.bf16.mxu1 %v3674_v31  ;;  %v3748_v28 = vld [vmem:[%s4237_s18 + $0x668] ss:$12 sps:$4 sm:$0xff]   ;;  %v3749_v31 = vld [vmem:[%s4237_s18 + $0x678] ss:$12 sps:$4 sm:$0xff]  }
 0x112   : > { %2393 = vmatprep.subr.bf16.mxu0 %v3673_v30  ;;  %v3752_v30 = vld [vmem:[%s4237_s18 + $0x740] ss:$12 sps:$4 sm:$0xff]  }
 0x114   : > { %3282 = vmatpush3.bf16.msra.mxu1 %v3675_v33  ;;  %v3756_v33 = vld [vmem:[%s4237_s18 + $0x694] ss:$12 sps:$4 sm:$0xff]  }
 0x115   : > { %2394 = vmatpush1.bf16.msra.mxu0 %v3671_v32  ;;  %3283 = vmatprep.subr.bf16.mxu1 %v3679_v35  ;;  %v3753_v32 = vld [vmem:[%s4237_s18 + $0x680] ss:$12 sps:$4 sm:$0xff]   ;;  %v3754_v35 = vld [vmem:[%s4237_s18 + $0x690] ss:$12 sps:$4 sm:$0xff]  }
 0x116   : > { %2395 = vmatprep.subr.bf16.mxu0 %v3678_v34  ;;  %v3757_v34 = vld [vmem:[%s4237_s18 + $0x758] ss:$12 sps:$4 sm:$0xff]  }
 0x118   : > { %3284 = vmatpush3.bf16.msra.mxu1 %v3680_v38  ;;  %v3762_v38 = vld [vmem:[%s4237_s18 + $0x770] ss:$12 sps:$4 sm:$0xff]  }
 0x119   : > { %2396 = vmatpush1.bf16.msra.mxu0 %v3676_v37  ;;  %3291 = vmatprep.subr.bf16.mxu1 %v3684_v40  ;;  %v3761_v37 = vld [vmem:[%s4237_s18 + $0x6ac] ss:$12 sps:$4 sm:$0xff]   ;;  %v3763_v40 = vld [vmem:[%s4237_s18 + $0x6b0] ss:$12 sps:$4 sm:$0xff]  }
 0x11a   : > { %2397 = vmatprep.subr.bf16.mxu0 %v3683_v39  ;;  %v3759_v39 = vld [vmem:[%s4237_s18 + $0x6a8] ss:$12 sps:$4 sm:$0xff]  }
 0x11b   : > { %2625 = vmatmul.mubr.bf16.vlgmr.msra.gmra.mrb[12].mxu1 %v4387_v8  ;;  %v3726_v8 = vld [vmem:[%s4237_s18 + $0x604] ss:$12 sps:$4 sm:$0xff]  }
 0x11c   : > { %3292 = vmatpush3.bf16.msra.mxu1 %v3685_v42  ;;  %2665 = vmatprep.mubr.bf16.mxu1 %v3723_v36  ;;  %v3758_v36 = vld [vmem:[%s4237_s18 + $0x698] ss:$12 sps:$4 sm:$0xff]   ;;  %v3770_v42 = vld [vmem:[%s4237_s18 + $0x848] ss:$12 sps:$4 sm:$0xff]  }
 0x11d   : > { %2398 = vmatpush1.bf16.msra.mxu0 %v3681_v41  ;;  %3293 = vmatprep.subr.bf16.mxu1 %v3689_v44  ;;  %v3769_v41 = vld [vmem:[%s4237_s18 + $0x6c4] ss:$12 sps:$4 sm:$0xff]  }
 0x11e   : > { %2399 = vmatprep.subr.bf16.mxu0 %v3688_v43  ;;  %v641_v43 = vlaneseq  ;;  %v4489_v44 = vld [vmem:[#allocation2 + $0x20] ss:$48 sps:$4 sm:$0xff]  }
 0x120   : > { %3294 = vmatpush3.bf16.msra.mxu1 %v3690_v46  ;;  %v3771_v46 = vld [vmem:[%s4237_s18 + $0x788] ss:$12 sps:$4 sm:$0xff]  }
 0x121   : > { %2400 = vmatpush1.bf16.msra.mxu0 %v3686_v45  ;;  %3295 = vmatprep.subr.bf16.mxu1 %v3694_v48  ;;  %v3767_v45 = vld [vmem:[%s4237_s18 + $0x6c0] ss:$12 sps:$4 sm:$0xff]  }
 0x122   : > { %2401 = vmatprep.subr.bf16.mxu0 %v3693_v47  ;;  %v3774_v47 = vld [vmem:[%s4237_s18 + $0x6dc] ss:$12 sps:$4 sm:$0xff]   ;;  %v3775_v48 = vld [vmem:[%s4237_s18 + $0x860] ss:$12 sps:$4 sm:$0xff]  }
 0x124   : > { %3296 = vmatpush3.bf16.msra.mxu1 %v3695_v50  ;;  %v3772_v50 = vld [vmem:[%s4237_s18 + $0x6d8] ss:$12 sps:$4 sm:$0xff]  }
 0x125   : > { %2402 = vmatpush1.bf16.msra.mxu0 %v3691_v49  ;;  %3297 = vmatprep.subr.bf16.mxu1 %v3699_v53  ;;  %v4496_v49 = vshrl.u32 %v641_v43, 7  ;;  %v3776_v53 = vld [vmem:[%s4237_s18 + $0x7a0] ss:$12 sps:$4 sm:$0xff]   ;;  %v3836_v43 = vld [vmem:[%s4237_s18 + $0x844] ss:$12 sps:$4 sm:$0xff]  }
 0x126   : > { %2403 = vmatprep.subr.bf16.mxu0 %v3698_v52  ;;  %v4499_v52 = vld [vmem:[#allocation2 + $0x2c] ss:$48 sps:$4 sm:$0xff]  }
 0x128   : > { %3298 = vmatpush3.bf16.msra.mxu1 %v3700_v54  ;;  %v3780_v54 = vld [vmem:[%s4237_s18 + $0x878] ss:$12 sps:$4 sm:$0xff]  }
 0x129   : > { %2404 = vmatpush1.bf16.msra.mxu0 %v3696_v51  ;;  %3299 = vmatprep.subr.bf16.mxu1 %v3704_v56  ;;  %v3779_v51 = vld [vmem:[%s4237_s18 + $0x6f4] ss:$12 sps:$4 sm:$0xff]   ;;  %v647_v56 = vsub.s32 1, %v4496_v49 }
 0x12a   : > { %2405 = vmatprep.subr.bf16.mxu0 %v3703_v55  ;;  %v643_v55 = vsub.s32 0, %v4496_v49 }
 0x12c   : > { %3300 = vmatpush3.bf16.msra.mxu1 %v3705_v58  ;;  %v3781_v58 = vld [vmem:[%s4237_s18 + $0x7b8] ss:$12 sps:$4 sm:$0xff]  }
 0x12d   : > { %2406 = vmatpush1.bf16.msra.mxu0 %v3701_v57  ;;  %3301 = vmatprep.subr.bf16.mxu1 %v3709_v60  ;;  %v3777_v57 = vld [vmem:[%s4237_s18 + $0x6f0] ss:$12 sps:$4 sm:$0xff]   ;;  %v3784_v60 = vld [vmem:[%s4237_s18 + $0x70c] ss:$12 sps:$4 sm:$0xff]  }
 0x12e   : > { %2407 = vmatprep.subr.bf16.mxu0 %v3708_v59  ;;  %v4510_v59 = vld [vmem:[%s211_s28] sm:$0x7] }
 0x130   : > { %3302 = vmatpush3.bf16.msra.mxu1 %v3710_v62  ;;  %v4515_v62 = vrot.slane %v4510_v59, %v643_v55  ;;  %v3849_v55 = vld [vmem:[%s4237_s18 + $0x8b8] ss:$12 sps:$4 sm:$0xff]  }
 0x131   : > { %2408 = vmatpush1.bf16.msra.mxu0 %v3706_v61  ;;  %3303 = vmatprep.subr.bf16.mxu1 %v3714_v0  ;;  %v3785_v61 = vld [vmem:[%s4237_s18 + $0x890] ss:$12 sps:$4 sm:$0xff]   ;;  %v3782_v0 = vld [vmem:[%s4237_s18 + $0x708] ss:$12 sps:$4 sm:$0xff]  }
 0x132   : > { %2409 = vmatprep.subr.bf16.mxu0 %v3713_v63  ;;  %v4518_v63 = vrot.slane %v4510_v59, %v647_v56  ;;  %v3854_v56 = vld [vmem:[%s4237_s18 + $0x8d4] ss:$12 sps:$4 sm:$0xff]  }
 0x134   : > { %3304 = vmatpush3.bf16.msra.mxu1 %v3715_v2  ;;  %v3789_v2 = vld [vmem:[%s4237_s18 + $0x724] ss:$12 sps:$4 sm:$0xff]  }
 0x135   : > { %2410 = vmatpush1.bf16.msra.mxu0 %v3711_v1  ;;  %3305 = vmatprep.subr.bf16.mxu1 %v3719_v5  ;;  %v3786_v1 = vld [vmem:[%s4237_s18 + $0x7d0] ss:$12 sps:$4 sm:$0xff]   ;;  %v3787_v5 = vld [vmem:[%s4237_s18 + $0x720] ss:$12 sps:$4 sm:$0xff]  }
 0x136   : > { %2411 = vmatprep.subr.bf16.mxu0 %v3718_v3  ;;  %v3790_v3 = vld [vmem:[%s4237_s18 + $0x8a8] ss:$12 sps:$4 sm:$0xff]  }
 0x138   : > { %3306 = vmatpush3.bf16.msra.mxu1 %v3720_v7  ;;  %v3794_v7 = vld [vmem:[%s4237_s18 + $0x73c] ss:$12 sps:$4 sm:$0xff]  }
 0x139   : > { %2412 = vmatpush1.bf16.msra.mxu0 %v3716_v6  ;;  %3313 = vmatprep.subr.bf16.mxu1 %v3727_v9  ;;  %v3791_v6 = vld [vmem:[%s4237_s18 + $0x7e8] ss:$12 sps:$4 sm:$0xff]   ;;  %v3792_v9 = vld [vmem:[%s4237_s18 + $0x738] ss:$12 sps:$4 sm:$0xff]  }
 0x13a   : > { %2424 = vmatprep.subr.bf16.mxu0 %v3726_v8  ;;  %v3795_v8 = vld [vmem:[%s4237_s18 + $0x8c0] ss:$12 sps:$4 sm:$0xff]  }
 0x13b   : > { %2666 = vmatmul.mubr.bf16.vlgmr.msra.gmra.mrb[16].mxu1 %v3721_v10 }
 0x13c   : > { %2414 = vmatmul.mubr.bf16.vlgmr.msra.gmra.mrb[0].mxu0 %v3721_v10  ;;  %3314 = vmatpush3.bf16.msra.mxu1 %v3728_v12  ;;  %v3796_v10 = vld [vmem:[%s4237_s18 + $0x800] ss:$12 sps:$4 sm:$0xff]   ;;  %v3800_v12 = vld [vmem:[%s4237_s18 + $0x8d8] ss:$12 sps:$4 sm:$0xff]  }
 0x13d   : > { %2425 = vmatpush1.bf16.msra.mxu0 %v3724_v11  ;;  %3315 = vmatprep.subr.bf16.mxu1 %v3732_v14  ;;  %v3799_v11 = vld [vmem:[%s4237_s18 + $0x754] ss:$12 sps:$4 sm:$0xff]   ;;  %v3801_v14 = vld [vmem:[%s4237_s18 + $0x818] ss:$12 sps:$4 sm:$0xff]  }
 0x13e   : > { %2426 = vmatprep.subr.bf16.mxu0 %v3731_v13  ;;  %2706 = vmatprep.mubr.bf16.mxu1 %v3766_v16  ;;  %v3797_v13 = vld [vmem:[%s4237_s18 + $0x750] ss:$12 sps:$4 sm:$0xff]  }
 0x13f   : > { %2456 = vmatprep.mubr.bf16.mxu0 %v3766_v16  ;;  %v3805_v16 = vld [vmem:[%s4237_s18 + $0x8f0] ss:$12 sps:$4 sm:$0xff]  }
 0x140   : > { %3316 = vmatpush3.bf16.msra.mxu1 %v3733_v17  ;;  %v3802_v17 = vld [vmem:[%s4237_s18 + $0x768] ss:$12 sps:$4 sm:$0xff]  }
 0x141   : > { %2427 = vmatpush1.bf16.msra.mxu0 %v3729_v15  ;;  %3317 = vmatprep.subr.bf16.mxu1 %v3737_v4  ;;  %v3804_v15 = vld [vmem:[%s4237_s18 + $0x76c] ss:$12 sps:$4 sm:$0xff]   ;;  %v3812_v4 = vld [vmem:[%s4237_s18 + $0x784] ss:$12 sps:$4 sm:$0xff]  }
 0x142   : > { %2428 = vmatprep.subr.bf16.mxu0 %v3736_v18  ;;  %v3806_v18 = vld [vmem:[%s4237_s18 + $0x830] ss:$12 sps:$4 sm:$0xff]  }
 0x144   : > { %3318 = vmatpush3.bf16.msra.mxu1 %v3738_v20  ;;  %v3810_v20 = vld [vmem:[%s4237_s18 + $0x780] ss:$12 sps:$4 sm:$0xff]  }
 0x145   : > { %2429 = vmatpush1.bf16.msra.mxu0 %v3734_v19  ;;  %3319 = vmatprep.subr.bf16.mxu1 %v3742_v22  ;;  %v4539_v19 = vld [vmem:[#allocation2 + $0x28] ss:$48 sps:$4 sm:$0xff]  }
 0x146   : > { %2430 = vmatprep.subr.bf16.mxu0 %v3741_v21  ;;  %v3815_v21 = vld [vmem:[%s4237_s18 + $0x79c] ss:$12 sps:$4 sm:$0xff]   ;;  %v3813_v22 = vld [vmem:[%s4237_s18 + $0x798] ss:$12 sps:$4 sm:$0xff]  }
 0x148   : > { %3320 = vmatpush3.bf16.msra.mxu1 %v3743_v24  ;;  %v3816_v24 = vld [vmem:[%s4237_s18 + $0x7b0] ss:$12 sps:$4 sm:$0xff]  }
 0x149   : > { %2431 = vmatpush1.bf16.msra.mxu0 %v3739_v23  ;;  %3321 = vmatprep.subr.bf16.mxu1 %v3747_v26  ;;  %v3818_v23 = vld [vmem:[%s4237_s18 + $0x7b4] ss:$12 sps:$4 sm:$0xff]  }
 0x14a   : > { %2432 = vmatprep.subr.bf16.mxu0 %v3746_v25  ;;  %v3821_v25 = vld [vmem:[%s4237_s18 + $0x7cc] ss:$12 sps:$4 sm:$0xff]   ;;  %v3819_v26 = vld [vmem:[%s4237_s18 + $0x7c8] ss:$12 sps:$4 sm:$0xff]  }
 0x14c   : > { %3322 = vmatpush3.bf16.msra.mxu1 %v3748_v28  ;;  %v3822_v28 = vld [vmem:[%s4237_s18 + $0x7e0] ss:$12 sps:$4 sm:$0xff]  }
 0x14d   : > { %2433 = vmatpush1.bf16.msra.mxu0 %v3744_v27  ;;  %3323 = vmatprep.subr.bf16.mxu1 %v3752_v30  ;;  %v3824_v27 = vld [vmem:[%s4237_s18 + $0x7e4] ss:$12 sps:$4 sm:$0xff]  }
 0x14e   : > { %2434 = vmatprep.subr.bf16.mxu0 %v3751_v29  ;;  %v3827_v29 = vld [vmem:[%s4237_s18 + $0x7fc] ss:$12 sps:$4 sm:$0xff]   ;;  %v3825_v30 = vld [vmem:[%s4237_s18 + $0x7f8] ss:$12 sps:$4 sm:$0xff]  }
 0x150   : > { %3324 = vmatpush3.bf16.msra.mxu1 %v3753_v32 }
 0x151   : > { %2435 = vmatpush1.bf16.msra.mxu0 %v3749_v31  ;;  %3325 = vmatprep.subr.bf16.mxu1 %v3757_v34  ;;  %v3830_v31 = vld [vmem:[%s4237_s18 + $0x814] ss:$12 sps:$4 sm:$0xff]  }
 0x152   : > { %2436 = vmatprep.subr.bf16.mxu0 %v3756_v33 }
 0x154   : > { %3326 = vmatpush3.bf16.msra.mxu1 %v3758_v36 }
 0x155   : > { %2437 = vmatpush1.bf16.msra.mxu0 %v3754_v35  ;;  %3327 = vmatprep.subr.bf16.mxu1 %v3762_v38  ;;  %v3828_v35 = vld [vmem:[%s4237_s18 + $0x810] ss:$12 sps:$4 sm:$0xff]   ;;  %v3833_v38 = vld [vmem:[%s4237_s18 + $0x82c] ss:$12 sps:$4 sm:$0xff]  }
 0x156   : > { %2438 = vmatprep.subr.bf16.mxu0 %v3761_v37 }
 0x158   : > { %3328 = vmatpush3.bf16.msra.mxu1 %v3763_v40 }
 0x159   : > { %2439 = vmatpush1.bf16.msra.mxu0 %v3759_v39  ;;  %3335 = vmatprep.subr.bf16.mxu1 %v3770_v42  ;;  %v3831_v42 = vld [vmem:[%s4237_s18 + $0x828] ss:$12 sps:$4 sm:$0xff]  }
 0x15a   : > { %2440 = vmatprep.subr.bf16.mxu0 %v3769_v41 }
 0x15b   : > { %2707 = vmatmul.mubr.bf16.vlgmr.msra.gmra.mrb[20].mxu1 %v4489_v44 }
 0x15c   : > { %3336 = vmatpush3.bf16.msra.mxu1 %v3771_v46  ;;  %2747 = vmatprep.mubr.bf16.mxu1 %v4499_v52  ;;  %v3837_v46 = vld [vmem:[%s4237_s18 + $0x858] ss:$12 sps:$4 sm:$0xff]  }
 0x15d   : > { %2441 = vmatpush1.bf16.msra.mxu0 %v3767_v45  ;;  %3337 = vmatprep.subr.bf16.mxu1 %v3775_v48  ;;  %v3839_v45 = vld [vmem:[%s4237_s18 + $0x85c] ss:$12 sps:$4 sm:$0xff]  }
 0x15e   : > { %2442 = vmatprep.subr.bf16.mxu0 %v3774_v47  ;;  %v3842_v47 = vld [vmem:[%s4237_s18 + $0x874] ss:$12 sps:$4 sm:$0xff]   ;;  %v3840_v48 = vld [vmem:[%s4237_s18 + $0x870] ss:$12 sps:$4 sm:$0xff]  }
 0x160   : > { %3338 = vmatpush3.bf16.msra.mxu1 %v3776_v53  ;;  %v3848_v53 = vld [vmem:[%s4237_s18 + $0x8a4] ss:$12 sps:$4 sm:$0xff]  }
 0x161   : > { %2443 = vmatpush1.bf16.msra.mxu0 %v3772_v50  ;;  %3339 = vmatprep.subr.bf16.mxu1 %v3780_v54  ;;  %v3845_v50 = vld [vmem:[%s4237_s18 + $0x88c] ss:$12 sps:$4 sm:$0xff]   ;;  %v3851_v54 = vld [vmem:[%s4237_s18 + $0x8bc] ss:$12 sps:$4 sm:$0xff]  }
 0x162   : > { %2444 = vmatprep.subr.bf16.mxu0 %v3779_v51  ;;  %v3846_v51 = vld [vmem:[%s4237_s18 + $0x8a0] ss:$12 sps:$4 sm:$0xff]  }
 0x164   : > { %3340 = vmatpush3.bf16.msra.mxu1 %v3781_v58 }
 0x165   : > { %2445 = vmatpush1.bf16.msra.mxu0 %v3777_v57  ;;  %3341 = vmatprep.subr.bf16.mxu1 %v3785_v61 }
 0x166   : > { %2446 = vmatprep.subr.bf16.mxu0 %v3784_v60  ;;  %v3852_v60 = vld [vmem:[%s4237_s18 + $0x8d0] ss:$12 sps:$4 sm:$0xff]  }
 0x168   : > { %3342 = vmatpush3.bf16.msra.mxu1 %v3786_v1 }
 0x169   : > { %2447 = vmatpush1.bf16.msra.mxu0 %v3782_v0  ;;  %3343 = vmatprep.subr.bf16.mxu1 %v3790_v3  ;;  %v651_v3 = vsub.s32 2, %v4496_v49 }
 0x16a   : > { %2448 = vmatprep.subr.bf16.mxu0 %v3789_v2  ;;  %v3855_v2 = vld [vmem:[%s4237_s18 + $0x8e8] ss:$12 sps:$4 sm:$0xff]  }
 0x16c   : > { %3344 = vmatpush3.bf16.msra.mxu1 %v3791_v6 }
 0x16d   : > { %2449 = vmatpush1.bf16.msra.mxu0 %v3787_v5  ;;  %3345 = vmatprep.subr.bf16.mxu1 %v3795_v8  ;;  %v652_v5 = vrot.slane %v4510_v59, %v651_v3 }
 0x16e   : > { %2450 = vmatprep.subr.bf16.mxu0 %v3794_v7 }
 0x170   : > { %3346 = vmatpush3.bf16.msra.mxu1 %v3796_v10 }
 0x171   : > { %2451 = vmatpush1.bf16.msra.mxu0 %v3792_v9  ;;  %3347 = vmatprep.subr.bf16.mxu1 %v3800_v12 }
 0x172   : > { %2452 = vmatprep.subr.bf16.mxu0 %v3799_v11 }
 0x174   : > { %3348 = vmatpush3.bf16.msra.mxu1 %v3801_v14 }
 0x175   : > { %2453 = vmatpush1.bf16.msra.mxu0 %v3797_v13  ;;  %3349 = vmatprep.subr.bf16.mxu1 %v3805_v16 }
 0x176   : > { %2454 = vmatprep.subr.bf16.mxu0 %v3804_v15 }
 0x178   : > { %3350 = vmatpush3.bf16.msra.mxu1 %v3806_v18 }
 0x179   : > { %2455 = vmatpush1.bf16.msra.mxu0 %v3802_v17 }
 0x17a   : > { %2467 = vmatprep.subr.bf16.mxu0 %v3812_v4 }
 0x17b   : > { %2748 = vmatmul.mubr.bf16.vlgmr.msra.gmra.mrb[24].mxu1 %v4539_v19 }
 0x17c   : > { %2457 = vmatmul.mubr.bf16.vlgmr.msra.gmra.mrb[0].mxu0 %v4489_v44  ;;  %v3834_v44 = vld [vmem:[%s4237_s18 + $0x840] ss:$12 sps:$4 sm:$0xff]  }
 0x17d   : > { %2468 = vmatpush1.bf16.msra.mxu0 %v3810_v20  ;;  %2499 = vmatprep.mubr.bf16.mxu0 %v4499_v52  ;;  %v3843_v52 = vld [vmem:[%s4237_s18 + $0x888] ss:$12 sps:$4 sm:$0xff]  }
 0x17e   : > { %2469 = vmatprep.subr.bf16.mxu0 %v3815_v21 }
 0x181   : > { %2470 = vmatpush1.bf16.msra.mxu0 %v3813_v22 }
 0x182   : > { %2471 = vmatprep.subr.bf16.mxu0 %v3818_v23 }
 0x185   : > { %2472 = vmatpush1.bf16.msra.mxu0 %v3816_v24 }
 0x186   : > { %2473 = vmatprep.subr.bf16.mxu0 %v3821_v25 }
 0x189   : > { %2474 = vmatpush1.bf16.msra.mxu0 %v3819_v26 }
 0x18a   : > { %2475 = vmatprep.subr.bf16.mxu0 %v3824_v27 }
 0x18d   : > { %2476 = vmatpush1.bf16.msra.mxu0 %v3822_v28 }
 0x18e   : > { %2477 = vmatprep.subr.bf16.mxu0 %v3827_v29  ;;  %v2286_v32 = vpop.f32.mrb[0].mxu1 }
 0x18f   : > { %v4557_v33 = vadd.f32 %v2286_v32, %v4515_v62  ;;  %v2288_v34 = vpop.f32.mrb[1].mxu1 }
 0x190   : > { %v4561_v36 = vadd.f32 %v2288_v34, %v4518_v63  ;;  %v2290_v37 = vpop.f32.mrb[2].mxu1 }
 0x191   : > { %2478 = vmatpush1.bf16.msra.mxu0 %v3825_v30  ;;  %v4565_v39 = vadd.f32 %v2290_v37, %v4515_v62  ;;  %v2292_v40 = vpop.f32.mrb[3].mxu1 }
 0x192   : > { %2479 = vmatprep.subr.bf16.mxu0 %v3830_v31  ;;  %v4568_v41 = vadd.f32 %v2292_v40, %v4518_v63  ;;  %v3857_v63 = vld [vmem:[%s4237_s18 + $0x8ec] ss:$12 sps:$4 sm:$0xff]  }
 0x195   : > { %2480 = vmatpush1.bf16.msra.mxu0 %v3828_v35 }
 0x196   : > { %2481 = vmatprep.subr.bf16.mxu0 %v3833_v38 }
 0x199   : > { %2482 = vmatpush1.bf16.msra.mxu0 %v3831_v42 }
 0x19a   : > { %2483 = vmatprep.subr.bf16.mxu0 %v3836_v43 }
 0x19d   : > { %2484 = vmatpush1.bf16.msra.mxu0 %v3834_v44 }
 0x19e   : > { %2485 = vmatprep.subr.bf16.mxu0 %v3839_v45 }
 0x1a1   : > { %2486 = vmatpush1.bf16.msra.mxu0 %v3837_v46 }
 0x1a2   : > { %2487 = vmatprep.subr.bf16.mxu0 %v3842_v47 }
 0x1a5   : > { %2488 = vmatpush1.bf16.msra.mxu0 %v3840_v48 }
 0x1a6   : > { %2489 = vmatprep.subr.bf16.mxu0 %v3845_v50 }
 0x1a9   : > { %2490 = vmatpush1.bf16.msra.mxu0 %v3843_v52 }
 0x1aa   : > { %2491 = vmatprep.subr.bf16.mxu0 %v3848_v53 }
 0x1ad   : > { %2492 = vmatpush1.bf16.msra.mxu0 %v3846_v51 }
 0x1ae   : > { %2493 = vmatprep.subr.bf16.mxu0 %v3851_v54  ;;  %v3241_v57 = vpop.f32.mrb[4].mxu1 }
 0x1af   : > { %v3242_v58 = vpop.f32.mrb[5].mxu1 }
 0x1b0   : > { %v3243_v61 = vadd.f32 %v3242_v58, %v3241_v57  ;;  %v3244_v62 = vpop.f32.mrb[6].mxu1 }
 0x1b1   : > { %2494 = vmatpush1.bf16.msra.mxu0 %v3849_v55  ;;  %v3245_v0 = vpop.f32.mrb[7].mxu1 }
 0x1b2   : > { %2495 = vmatprep.subr.bf16.mxu0 %v3854_v56  ;;  %v3246_v1 = vadd.f32 %v3245_v0, %v3244_v62  ;;  %v2545_v6 = vadd.f32 %v3243_v61, %v652_v5 }
 0x1b4   : > { %v2548_v9 = vadd.f32 %v3246_v1, %v652_v5 }
 0x1b5   : > { %2496 = vmatpush1.bf16.msra.mxu0 %v3852_v60 }
 0x1b6   : > { %2497 = vmatprep.subr.bf16.mxu0 %v3857_v63 }
 0x1b9   : > { %2498 = vmatpush1.bf16.msra.mxu0 %v3855_v2 }
 0x1bc   : > { %2500 = vmatmul.mubr.bf16.vlgmr.msra.gmra.mrb[0].mxu0 %v4539_v19 }
 0x1ce   : > { %v3263_v7 = vpop.f32.mrb[8].mxu1 }
 0x1cf   : > { %v3264_v8 = vpop.f32.mrb[9].mxu1 }
 0x1d0   : > { %v3265_v10 = vadd.f32 %v3264_v8, %v3263_v7  ;;  %v3266_v11 = vpop.f32.mrb[10].mxu1 }
 0x1d1   : > { %v3267_v12 = vpop.f32.mrb[11].mxu1 }
 0x1d2   : > { %v2586_v13 = vadd.f32 %v3265_v10, %v2545_v6  ;;  %v3268_v14 = vadd.f32 %v3267_v12, %v3266_v11 }
 0x1d4   : > { %v2589_v15 = vadd.f32 %v3268_v14, %v2548_v9 }
 0x1ee   : > { %v3285_v16 = vpop.f32.mrb[12].mxu1 }
 0x1ef   : > { %v3286_v17 = vpop.f32.mrb[13].mxu1 }
 0x1f0   : > { %v3287_v18 = vadd.f32 %v3286_v17, %v3285_v16  ;;  %v3288_v4 = vpop.f32.mrb[14].mxu1 }
 0x1f1   : > { %v3289_v20 = vpop.f32.mrb[15].mxu1 }
 0x1f2   : > { %v2627_v19 = vadd.f32 %v3287_v18, %v2586_v13  ;;  %v3290_v21 = vadd.f32 %v3289_v20, %v3288_v4 }
 0x1f4   : > { %v2630_v49 = vadd.f32 %v3290_v21, %v2589_v15 }
 0x20e   : > { %v3307_v22 = vpop.f32.mrb[16].mxu1 }
 0x20f   : > { %v3308_v59 = vpop.f32.mrb[17].mxu1 }
 0x210   : > { %v3309_v23 = vadd.f32 %v3308_v59, %v3307_v22  ;;  %v3310_v24 = vpop.f32.mrb[18].mxu1 }
 0x211   : > { %v3311_v25 = vpop.f32.mrb[19].mxu1 }
 0x212   : > { %v2668_v26 = vadd.f32 %v3309_v23, %v2627_v19  ;;  %v3312_v27 = vadd.f32 %v3311_v25, %v3310_v24 }
 0x214   : > { %v2671_v28 = vadd.f32 %v3312_v27, %v2630_v49 }
 0x22e   : > { %v3329_v29 = vpop.f32.mrb[20].mxu1 }
 0x22f   : > { %v3330_v30 = vpop.f32.mrb[21].mxu1 }
 0x230   : > { %v3331_v31 = vadd.f32 %v3330_v30, %v3329_v29  ;;  %v3332_v32 = vpop.f32.mrb[22].mxu1 }
 0x231   : > { %v3333_v34 = vpop.f32.mrb[23].mxu1 }
 0x232   : > { %v2709_v35 = vadd.f32 %v3331_v31, %v2668_v26  ;;  %v3334_v37 = vadd.f32 %v3333_v34, %v3332_v32 }
 0x234   : > { %v2712_v38 = vadd.f32 %v3334_v37, %v2671_v28 }
 0x24e   : > { %v3351_v40 = vpop.f32.mrb[24].mxu1 }
 0x24f   : > { %v3352_v42 = vpop.f32.mrb[25].mxu1 }
 0x250   : > { %v3353_v43 = vadd.f32 %v3352_v42, %v3351_v40  ;;  %v3354_v44 = vpop.f32.mrb[26].mxu1 }
 0x251   : > { %v3355_v45 = vpop.f32.mrb[27].mxu1 }
 0x252   : > { %v2750_v46 = vadd.f32 %v3353_v43, %v2709_v35  ;;  %v3356_v47 = vadd.f32 %v3355_v45, %v3354_v44 }
 0x254   : > { %v2764_v48 = vmul.f32 0.70710677, %v2750_v46  ;;  %v2753_v50 = vadd.f32 %v3356_v47, %v2712_v38  ;;  %v2758_v51 = vmul.f32 0.5, %v2750_v46 }
 0x256   : > { %3858 = verf.f32 %v2764_v48  ;;  %v2767_v52 = vmul.f32 0.70710677, %v2753_v50  ;;  %v2761_v57 = vmul.f32 0.5, %v2753_v50 }
 0x258   : > { %3860 = verf.f32 %v2767_v52 }
 0x260   : > { %v3859_v53 = vpop.eup %3858 }
 0x261   : > { %v2776_v54 = vadd.f32 1.0, %v3859_v53 }
 0x262   : > { %v3861_v55 = vpop.eup %3860 }
 0x263   : > { %v2782_v56 = vmul.f32 %v2776_v54, %v2758_v51  ;;  %v2779_v58 = vadd.f32 1.0, %v3861_v55 }
 0x265   : > { %2788 = vst [vmem:[%s4591_s17 + $0x10] sm:$0xff] %v2782_v56  ;;  %v2785_v60 = vmul.f32 %v2779_v58, %v2761_v57 }
 0x267   : > { %2791 = vst [vmem:[%s4591_s17 + $0x28] sm:$0xff] %v2785_v60 }
 0x28f   : > { %v2501_v61 = vpop.f32.mrb[0].mxu0 }
 0x290   : > { %v3358_v62 = vadd.f32 %v2501_v61, %v4557_v33  ;;  %v2503_v63 = vpop.f32.mrb[1].mxu0 }
 0x291   : > { %v3360_v0 = vadd.f32 %v2503_v63, %v4561_v36  ;;  %v2505_v1 = vpop.f32.mrb[2].mxu0 }
 0x292   : > { %v2762_v2 = vmul.f32 0.70710677, %v3358_v62  ;;  %v3362_v3 = vadd.f32 %v2505_v1, %v4565_v39  ;;  %v2507_v5 = vpop.f32.mrb[3].mxu0  ;;  %v2756_v36 = vmul.f32 0.5, %v3358_v62 }
 0x293   : > { %v2763_v6 = vmul.f32 0.70710677, %v3360_v0  ;;  %v3364_v7 = vadd.f32 %v2507_v5, %v4568_v41  ;;  %v2757_v39 = vmul.f32 0.5, %v3360_v0 }
 0x294   : > { %3862 = verf.f32 %v2762_v2  ;;  %v2765_v8 = vmul.f32 0.70710677, %v3362_v3  ;;  %v2759_v15 = vmul.f32 0.5, %v3362_v3 }
 0x295   : > { %3864 = verf.f32 %v2763_v6  ;;  %v2766_v9 = vmul.f32 0.70710677, %v3364_v7  ;;  %v2760_v18 = vmul.f32 0.5, %v3364_v7 }
 0x296   : > { %3866 = verf.f32 %v2765_v8 }
 0x297   : > { %3868 = verf.f32 %v2766_v9 }
 0x29e   : > { %v3863_v33 = vpop.eup %3862 }
 0x29f   : > { %v3865_v10 = vpop.eup %3864  ;;  %v2774_v11 = vadd.f32 1.0, %v3863_v33 }
 0x2a0   : > { %v3867_v12 = vpop.eup %3866  ;;  %v2775_v13 = vadd.f32 1.0, %v3865_v10 }
 0x2a1   : > { %v3869_v41 = vpop.eup %3868  ;;  %v2780_v14 = vmul.f32 %v2774_v11, %v2756_v36  ;;  %v2777_v16 = vadd.f32 1.0, %v3867_v12 }
 0x2a2   : > { %v2781_v17 = vmul.f32 %v2775_v13, %v2757_v39  ;;  %v2778_v4 = vadd.f32 1.0, %v3869_v41 }
 0x2a3   : > { %2786 = vst [vmem:[%s4591_s17] sm:$0xff] %v2780_v14  ;;  %v2783_v20 = vmul.f32 %v2777_v16, %v2759_v15 }
 0x2a4   : > { %2787 = vst [vmem:[%s4591_s17 + $0x8] sm:$0xff] %v2781_v17  ;;  %v2784_v19 = vmul.f32 %v2778_v4, %v2760_v18 }
 0x2a5   : > { %2789 = vst [vmem:[%s4591_s17 + $0x18] sm:$0xff] %v2783_v20 }
 0x2a6   : > { %2790 = vst [vmem:[%s4591_s17 + $0x20] sm:$0xff] %v2784_v19 }
 0x2a7   : > { %3971 = shalt.err (!%p3968_p5)
}
 0x2a8   : > { %s3972_s8 = scalar_lea.hbm %s4607_s26, 768  ;;  %s3976_s23 = scalar_lea.hbm %s4657_s3, 1536 }
 0x2a9   : > { %p3973_p9 = scmp.ne.s32.totalorder %s4607_s26, %s3972_s8  ;;  %p3977_p3 = scmp.lt.u32.totalorder %s4607_s26, %s4657_s3 }
 0x2aa   : > { %p3978_p0 = scmp.lt.u32.totalorder %s3976_s23, %s3972_s8  ;;  %p3980_p1 = scmp.lt.u32.totalorder %s3972_s8, %s4607_s26 }
 0x2ab   : > { %p3974_p12 = pnand %p3973_p9, %p4681_p2 }
 0x2ac   : > { %p3979_p10 = por %p3978_p0, %p3977_p3 }
 0x2ad   : > { %p3975_p7 = pneg %p3974_p12 }
 0x2ae   : > { %p3981_p4 = por %p3980_p1, %p3979_p10 }
 0x2b0   : > { %p3982_p11 = pnand %p3981_p4, %p3975_p7 }
 0x2b2   : > { %3985 = shalt.err (!%p3982_p11)
}
 0x2b3   : > { %s4039_s30 = smov 384   ;;  %s4040_s28 = smov 768  }
 0x2b4   : > { %s4041_s4 = smov 24  }
 0x2b5   : > { %3394 = dma.vmem_to_hbm [thread:$0]  (%p4681_p2), %s4601_s20, 768, %s4607_s26, %s2793_s21, %s4039_s30, %s4040_s28, %s4041_s4  }
 0x2b6 PF: > { %s2821_s17 = sand.u32 1, %s4016_s12   ;;  %p4682_p13 = scmp.ne.s32.totalorder %s4671_s29, 0 }
 0x2b7   : > { %p4683_p8 = scmp.ge.s32.totalorder %s4028_s15, 2  ;;  %s2822_s22 = scalar_lea.sflag [#allocation4], %s2821_s17 }
 0x2b9   : > { %p3408_p6 = pnand %p4683_p8, %p4682_p13 }
 0x2bb   : > { %4011 = dma.done.wait (!%p3408_p6), %s2822_s22, 768  }
 0x2bc   : > { %4013 = vsyncadd (!%p3408_p6), %s2822_s22, 4294966528  ;;  %s4684_s25 = sld [smem:[#allocation12_spill]]  ;;  %p17_p5 = scmp.ge.s32.totalorder %s4083_s16, 4  }
 0x2bd   : > { %s4685_s12 = smov %s4020_s13  ;;  %s4686_s13 = smov %s4024_s14 }
 0x2be   : > { %s4688_s15 = smov %s4083_s16  ;;  %19 = sbr.rel (!%p17_p5) target bundleno = 8 (0x8), region = 93 }
 0x2c2   : > { %s4687_s14 = smov %s4684_s25 }
 0x2c5   :  { %2827 = vsyncpa [#allocation3], 1 }
 0x2c6   :  { %2829 = vsyncpa [#allocation3 + $0x1], 1 }
 0x2c7   :  { %2830 = vsyncpa [#allocation6], 1 }
 0x2c8   :  { %2832 = vsyncpa [#allocation6 + $0x1], 1 }
 0x2c9   :  { %2833 = vsyncpa [#allocation4], 1 }
 0x2ca   :  { %2835 = vsyncpa [#allocation4 + $0x1], 1 }

</bundles_post_ra>
